<compile_context>
chip_gen: v5e
topology: v5e:2x2
jax: 0.10.0
libtpu: 0.0.40
codegen_flags: <defaults>
</compile_context>

<pallas_src>
import jax
import jax.numpy as jnp
import numpy as np
from jax.experimental import pallas as pl
from jax.experimental.pallas import tpu as pltpu

C_IN, C_OUT, K = 3, 2, 3


def _make_kernel(H, W):
    W2 = 2 * W

    def kernel(xd_ref, w1v_ref, b1v_ref, w2v_ref, b2v_ref, out_ref):
        # xd_ref : (C_IN, H, 2W) f32  each input channel duplicated along lanes
        # w1v_ref: (C_IN, 2W)    f32  1x1 weights, lane-split per output channel
        # b1v_ref: (1, 2W)       f32  conv1 bias + 3.0, lane-split
        # w2v_ref: (C_IN*K*K,2W) f32  3x3 weights * (1/6), lane-split
        # b2v_ref: (1, 2W)       f32  conv2 bias * (1/6), lane-split
        # out_ref: (H, 2W)       f32  lane-dense output: [:, :W]=co0, [:, W:]=co1

        ri = jax.lax.broadcasted_iota(jnp.int32, (H, W2), 0)   # row index
        li = jax.lax.broadcasted_iota(jnp.int32, (H, W2), 1)   # lane index
        # boundary masks: zero rows/lanes that came from circular wrap-around
        # (these are exactly the conv zero-padding positions; the lane masks
        #  also kill the seam between the two duplicated channel copies).
        m_kh0 = ri > 0                                          # tap row h-1
        m_kh2 = ri < H - 1                                      # tap row h+1
        m_kw0 = jnp.logical_and(li != 0, li != W)               # tap col w-1
        m_kw2 = jnp.logical_and(li != W - 1, li != W2 - 1)      # tap col w+1

        # ---- conv1 (1x1) branch: v3 = clamp(conv1(x) + bias + 3, 0, 6) ----
        acc1 = w1v_ref[0:1, :] * xd_ref[0]
        for ci in range(1, C_IN):
            acc1 = acc1 + w1v_ref[ci:ci + 1, :] * xd_ref[ci]
        v3 = jnp.clip(acc1 + b1v_ref[...], 0.0, 6.0)            # +3 prefolded

        # ---- conv2 (3x3) branch (weights/bias carry the trailing 1/6) ----
        acc2 = None
        for ci in range(C_IN):
            xc = xd_ref[ci]                                     # (H, 2W)
            for kh in range(K):
                if kh == 1:
                    hsh = xc
                else:
                    sh = (1 - kh) % H                           # +1 or H-1
                    hsh = jnp.where(m_kh0 if kh == 0 else m_kh2,
                                    pltpu.roll(xc, shift=sh, axis=0), 0.0)
                for kw in range(K):
                    if kw == 1:
                        tap = hsh
                    else:
                        sw = (1 - kw) % W2                      # +1 or 2W-1
                        tap = jnp.where(m_kw0 if kw == 0 else m_kw2,
                                        pltpu.roll(hsh, shift=sw, axis=1), 0.0)
                    widx = (ci * K + kh) * K + kw
                    term = w2v_ref[widx:widx + 1, :] * tap
                    acc2 = term if acc2 is None else acc2 + term

        v4s = acc2 + b2v_ref[...]
        out_ref[...] = v4s * v3

    return kernel


@jax.jit
def model_forward(x, w1, b1, w2, b2):
    """x: (1, 3, H, W) f32 NCHW.  Returns (1, 2, H, W, 1, 1) f32."""
    N, C, H, W = x.shape
    assert N == 1 and C == C_IN
    W2 = 2 * W

    # Lane-dense layout plumbing (tiny XLA ops outside the kernel):
    #  - duplicate each input channel along lanes so one (H, 2W) slab feeds
    #    both output channels' accumulators simultaneously,
    #  - expand weights/biases into per-lane vectors split at lane W,
    #  - fold +3 into the conv1 bias and the /6 into the conv2 params.
    x0 = x[0]                                                    # (C_IN, H, W)
    xd = jnp.concatenate([x0, x0], axis=-1)                      # (C_IN, H, 2W)

    w1v = jnp.repeat(w1.T, W, axis=1)                            # (C_IN, 2W)
    b1v = jnp.repeat(b1 + 3.0, W)[None, :]                       # (1, 2W)
    w2r = jnp.transpose(w2, (1, 2, 3, 0)).reshape(C_IN * K * K, C_OUT) * (1.0 / 6.0)
    w2v = jnp.repeat(w2r, W, axis=1)                             # (C_IN*K*K, 2W)
    b2v = jnp.repeat(b2 * (1.0 / 6.0), W)[None, :]               # (1, 2W)

    out = pl.pallas_call(
        _make_kernel(H, W),
        out_shape=jax.ShapeDtypeStruct((H, W2), jnp.float32),
        in_specs=[
            pl.BlockSpec(memory_space=pltpu.MemorySpace.VMEM),   # xd
            pl.BlockSpec(memory_space=pltpu.MemorySpace.VMEM),   # w1v
            pl.BlockSpec(memory_space=pltpu.MemorySpace.VMEM),   # b1v (+3 folded)
            pl.BlockSpec(memory_space=pltpu.MemorySpace.VMEM),   # w2v (/6 folded)
            pl.BlockSpec(memory_space=pltpu.MemorySpace.VMEM),   # b2v (/6 folded)
        ],
        out_specs=pl.BlockSpec(memory_space=pltpu.MemorySpace.VMEM),
    )(xd, w1v, b1v, w2v, b2v)

    # unpack the lane-dense slab back to (C_OUT, H, W), then the two
    # trailing unsqueezes of the PyTorch module.
    out = out.reshape(H, C_OUT, W).transpose(1, 0, 2)
    return out[None, :, :, :, None, None]


def reference(x, w1, b1, w2, b2):
    """Pure-JAX reference (lax convs) for validation."""
    dn = ("NCHW", "OIHW", "NCHW")
    v1 = jax.lax.conv_general_dilated(
        x, w1.reshape(C_OUT, C_IN, 1, 1), (1, 1), "VALID", dimension_numbers=dn
    ) + b1[None, :, None, None]
    v3 = jnp.clip(v1 + 3.0, 0.0, 6.0)
    v4 = jax.lax.conv_general_dilated(
        x, w2, (1, 1), "SAME", dimension_numbers=dn
    ) + b2[None, :, None, None]
    return ((v4 * v3) / 6.0)[..., None, None]


if __name__ == "__main__":
    key = jax.random.PRNGKey(0)
    kx, kw1, kb1, kw2, kb2 = jax.random.split(key, 5)

    H = W = 64  # matches the module spec: torch.randn(1, 3, 64, 64)
    x = jax.random.normal(kx, (1, C_IN, H, W), dtype=jnp.float32)

    # deterministic synthetic parameters (shapes match the torch module)
    w1 = 0.3 * jax.random.normal(kw1, (C_OUT, C_IN), dtype=jnp.float32)        # conv1 weight (1x1)
    b1 = 0.1 * jax.random.normal(kb1, (C_OUT,), dtype=jnp.float32)             # conv1 bias
    w2 = 0.2 * jax.random.normal(kw2, (C_OUT, C_IN, K, K), dtype=jnp.float32)  # conv2 weight (3x3)
    b2 = 0.1 * jax.random.normal(kb2, (C_OUT,), dtype=jnp.float32)             # conv2 bias

    out = jax.block_until_ready(model_forward(x, w1, b1, w2, b2))
    ref = jax.block_until_ready(reference(x, w1, b1, w2, b2))

    assert out.shape == (1, C_OUT, H, W, 1, 1), out.shape
    assert np.allclose(np.asarray(out), np.asarray(ref), rtol=1e-5, atol=1e-5)
    print("KERNEL_OK")
</pallas_src>

<mosaic_0001>
module attributes {stable_mosaic.version = 11 : i64} {
  func.func @kernel(%arg0: memref<3x64x128xf32, #tpu.memory_space<vmem>>, %arg1: memref<3x128xf32, #tpu.memory_space<vmem>>, %arg2: memref<1x128xf32, #tpu.memory_space<vmem>>, %arg3: memref<27x128xf32, #tpu.memory_space<vmem>>, %arg4: memref<1x128xf32, #tpu.memory_space<vmem>>, %arg5: memref<64x128xf32, #tpu.memory_space<vmem>>) attributes {dimension_semantics = [], scalar_prefetch = 0 : i64, scratch_operands = 0 : i64, tpu.core_type = #tpu.core_type<tc>} {
    %0 = tpu.iota {dimensions = array<i32: 0>} : vector<64x128xi32>
    %1 = tpu.iota {dimensions = array<i32: 1>} : vector<64x128xi32>
    %c0_i32 = arith.constant 0 : i32
    %2 = vector.broadcast %c0_i32 : i32 to vector<64x128xi32>
    %3 = arith.cmpi sgt, %0, %2 : vector<64x128xi32>
    %c63_i32 = arith.constant 63 : i32
    %4 = vector.broadcast %c63_i32 : i32 to vector<64x128xi32>
    %5 = arith.cmpi slt, %0, %4 : vector<64x128xi32>
    %c0_i32_0 = arith.constant 0 : i32
    %6 = vector.broadcast %c0_i32_0 : i32 to vector<64x128xi32>
    %7 = arith.cmpi ne, %1, %6 : vector<64x128xi32>
    %c64_i32 = arith.constant 64 : i32
    %8 = vector.broadcast %c64_i32 : i32 to vector<64x128xi32>
    %9 = arith.cmpi ne, %1, %8 : vector<64x128xi32>
    %10 = arith.andi %7, %9 : vector<64x128xi1>
    %c63_i32_1 = arith.constant 63 : i32
    %11 = vector.broadcast %c63_i32_1 : i32 to vector<64x128xi32>
    %12 = arith.cmpi ne, %1, %11 : vector<64x128xi32>
    %c127_i32 = arith.constant 127 : i32
    %13 = vector.broadcast %c127_i32 : i32 to vector<64x128xi32>
    %14 = arith.cmpi ne, %1, %13 : vector<64x128xi32>
    %15 = arith.andi %12, %14 : vector<64x128xi1>
    %c0 = arith.constant 0 : index
    %c0_2 = arith.constant 0 : index
    %16 = vector.load %arg1[%c0, %c0_2] : memref<3x128xf32, #tpu.memory_space<vmem>>, vector<1x128xf32>
    %c0_3 = arith.constant 0 : index
    %c0_4 = arith.constant 0 : index
    %c0_5 = arith.constant 0 : index
    %17 = vector.load %arg0[%c0_3, %c0_4, %c0_5] : memref<3x64x128xf32, #tpu.memory_space<vmem>>, vector<1x64x128xf32>
    %18 = vector.shape_cast %17 : vector<1x64x128xf32> to vector<64x128xf32>
    %19 = vector.broadcast %16 : vector<1x128xf32> to vector<64x128xf32>
    %20 = arith.mulf %19, %18 : vector<64x128xf32>
    %c1 = arith.constant 1 : index
    %c0_6 = arith.constant 0 : index
    %21 = vector.load %arg1[%c1, %c0_6] : memref<3x128xf32, #tpu.memory_space<vmem>>, vector<1x128xf32>
    %c1_7 = arith.constant 1 : index
    %c0_8 = arith.constant 0 : index
    %c0_9 = arith.constant 0 : index
    %22 = vector.load %arg0[%c1_7, %c0_8, %c0_9] : memref<3x64x128xf32, #tpu.memory_space<vmem>>, vector<1x64x128xf32>
    %23 = vector.shape_cast %22 : vector<1x64x128xf32> to vector<64x128xf32>
    %24 = vector.broadcast %21 : vector<1x128xf32> to vector<64x128xf32>
    %25 = arith.mulf %24, %23 : vector<64x128xf32>
    %26 = arith.addf %20, %25 : vector<64x128xf32>
    %c2 = arith.constant 2 : index
    %c0_10 = arith.constant 0 : index
    %27 = vector.load %arg1[%c2, %c0_10] : memref<3x128xf32, #tpu.memory_space<vmem>>, vector<1x128xf32>
    %c2_11 = arith.constant 2 : index
    %c0_12 = arith.constant 0 : index
    %c0_13 = arith.constant 0 : index
    %28 = vector.load %arg0[%c2_11, %c0_12, %c0_13] : memref<3x64x128xf32, #tpu.memory_space<vmem>>, vector<1x64x128xf32>
    %29 = vector.shape_cast %28 : vector<1x64x128xf32> to vector<64x128xf32>
    %30 = vector.broadcast %27 : vector<1x128xf32> to vector<64x128xf32>
    %31 = arith.mulf %30, %29 : vector<64x128xf32>
    %32 = arith.addf %26, %31 : vector<64x128xf32>
    %c0_14 = arith.constant 0 : index
    %c0_15 = arith.constant 0 : index
    %33 = vector.load %arg2[%c0_14, %c0_15] : memref<1x128xf32, #tpu.memory_space<vmem>>, vector<1x128xf32>
    %34 = vector.broadcast %33 : vector<1x128xf32> to vector<64x128xf32>
    %35 = arith.addf %32, %34 : vector<64x128xf32>
    %cst = arith.constant 0.000000e+00 : f32
    %cst_16 = arith.constant 6.000000e+00 : f32
    %36 = vector.broadcast %cst : f32 to vector<64x128xf32>
    %37 = arith.maximumf %36, %35 : vector<64x128xf32>
    %38 = vector.broadcast %cst_16 : f32 to vector<64x128xf32>
    %39 = arith.minimumf %38, %37 : vector<64x128xf32>
    %c0_17 = arith.constant 0 : index
    %c0_18 = arith.constant 0 : index
    %c0_19 = arith.constant 0 : index
    %40 = vector.load %arg0[%c0_17, %c0_18, %c0_19] : memref<3x64x128xf32, #tpu.memory_space<vmem>>, vector<1x64x128xf32>
    %41 = vector.shape_cast %40 : vector<1x64x128xf32> to vector<64x128xf32>
    %c1_i32 = arith.constant 1 : i32
    %42 = tpu.dynamic_rotate %41 by %c1_i32 dim 0 : vector<64x128xf32>, i32 -> vector<64x128xf32>
    %cst_20 = arith.constant 0.000000e+00 : f32
    %43 = vector.broadcast %cst_20 : f32 to vector<64x128xf32>
    %44 = arith.select %3, %42, %43 : vector<64x128xi1>, vector<64x128xf32>
    %c1_i32_21 = arith.constant 1 : i32
    %45 = tpu.dynamic_rotate %44 by %c1_i32_21 dim 1 : vector<64x128xf32>, i32 -> vector<64x128xf32>
    %cst_22 = arith.constant 0.000000e+00 : f32
    %46 = vector.broadcast %cst_22 : f32 to vector<64x128xf32>
    %47 = arith.select %10, %45, %46 : vector<64x128xi1>, vector<64x128xf32>
    %c0_23 = arith.constant 0 : index
    %c0_24 = arith.constant 0 : index
    %48 = vector.load %arg3[%c0_23, %c0_24] : memref<27x128xf32, #tpu.memory_space<vmem>>, vector<1x128xf32>
    %49 = vector.broadcast %48 : vector<1x128xf32> to vector<64x128xf32>
    %50 = arith.mulf %49, %47 : vector<64x128xf32>
    %c1_25 = arith.constant 1 : index
    %c0_26 = arith.constant 0 : index
    %51 = vector.load %arg3[%c1_25, %c0_26] : memref<27x128xf32, #tpu.memory_space<vmem>>, vector<1x128xf32>
    %52 = vector.broadcast %51 : vector<1x128xf32> to vector<64x128xf32>
    %53 = arith.mulf %52, %44 : vector<64x128xf32>
    %54 = arith.addf %50, %53 : vector<64x128xf32>
    %c127_i32_27 = arith.constant 127 : i32
    %55 = tpu.dynamic_rotate %44 by %c127_i32_27 dim 1 : vector<64x128xf32>, i32 -> vector<64x128xf32>
    %cst_28 = arith.constant 0.000000e+00 : f32
    %56 = vector.broadcast %cst_28 : f32 to vector<64x128xf32>
    %57 = arith.select %15, %55, %56 : vector<64x128xi1>, vector<64x128xf32>
    %c2_29 = arith.constant 2 : index
    %c0_30 = arith.constant 0 : index
    %58 = vector.load %arg3[%c2_29, %c0_30] : memref<27x128xf32, #tpu.memory_space<vmem>>, vector<1x128xf32>
    %59 = vector.broadcast %58 : vector<1x128xf32> to vector<64x128xf32>
    %60 = arith.mulf %59, %57 : vector<64x128xf32>
    %61 = arith.addf %54, %60 : vector<64x128xf32>
    %c1_i32_31 = arith.constant 1 : i32
    %62 = tpu.dynamic_rotate %41 by %c1_i32_31 dim 1 : vector<64x128xf32>, i32 -> vector<64x128xf32>
    %cst_32 = arith.constant 0.000000e+00 : f32
    %63 = vector.broadcast %cst_32 : f32 to vector<64x128xf32>
    %64 = arith.select %10, %62, %63 : vector<64x128xi1>, vector<64x128xf32>
    %c3 = arith.constant 3 : index
    %c0_33 = arith.constant 0 : index
    %65 = vector.load %arg3[%c3, %c0_33] : memref<27x128xf32, #tpu.memory_space<vmem>>, vector<1x128xf32>
    %66 = vector.broadcast %65 : vector<1x128xf32> to vector<64x128xf32>
    %67 = arith.mulf %66, %64 : vector<64x128xf32>
    %68 = arith.addf %61, %67 : vector<64x128xf32>
    %c4 = arith.constant 4 : index
    %c0_34 = arith.constant 0 : index
    %69 = vector.load %arg3[%c4, %c0_34] : memref<27x128xf32, #tpu.memory_space<vmem>>, vector<1x128xf32>
    %70 = vector.broadcast %69 : vector<1x128xf32> to vector<64x128xf32>
    %71 = arith.mulf %70, %41 : vector<64x128xf32>
    %72 = arith.addf %68, %71 : vector<64x128xf32>
    %c127_i32_35 = arith.constant 127 : i32
    %73 = tpu.dynamic_rotate %41 by %c127_i32_35 dim 1 : vector<64x128xf32>, i32 -> vector<64x128xf32>
    %cst_36 = arith.constant 0.000000e+00 : f32
    %74 = vector.broadcast %cst_36 : f32 to vector<64x128xf32>
    %75 = arith.select %15, %73, %74 : vector<64x128xi1>, vector<64x128xf32>
    %c5 = arith.constant 5 : index
    %c0_37 = arith.constant 0 : index
    %76 = vector.load %arg3[%c5, %c0_37] : memref<27x128xf32, #tpu.memory_space<vmem>>, vector<1x128xf32>
    %77 = vector.broadcast %76 : vector<1x128xf32> to vector<64x128xf32>
    %78 = arith.mulf %77, %75 : vector<64x128xf32>
    %79 = arith.addf %72, %78 : vector<64x128xf32>
    %c63_i32_38 = arith.constant 63 : i32
    %80 = tpu.dynamic_rotate %41 by %c63_i32_38 dim 0 : vector<64x128xf32>, i32 -> vector<64x128xf32>
    %cst_39 = arith.constant 0.000000e+00 : f32
    %81 = vector.broadcast %cst_39 : f32 to vector<64x128xf32>
    %82 = arith.select %5, %80, %81 : vector<64x128xi1>, vector<64x128xf32>
    %c1_i32_40 = arith.constant 1 : i32
    %83 = tpu.dynamic_rotate %82 by %c1_i32_40 dim 1 : vector<64x128xf32>, i32 -> vector<64x128xf32>
    %cst_41 = arith.constant 0.000000e+00 : f32
    %84 = vector.broadcast %cst_41 : f32 to vector<64x128xf32>
    %85 = arith.select %10, %83, %84 : vector<64x128xi1>, vector<64x128xf32>
    %c6 = arith.constant 6 : index
    %c0_42 = arith.constant 0 : index
    %86 = vector.load %arg3[%c6, %c0_42] : memref<27x128xf32, #tpu.memory_space<vmem>>, vector<1x128xf32>
    %87 = vector.broadcast %86 : vector<1x128xf32> to vector<64x128xf32>
    %88 = arith.mulf %87, %85 : vector<64x128xf32>
    %89 = arith.addf %79, %88 : vector<64x128xf32>
    %c7 = arith.constant 7 : index
    %c0_43 = arith.constant 0 : index
    %90 = vector.load %arg3[%c7, %c0_43] : memref<27x128xf32, #tpu.memory_space<vmem>>, vector<1x128xf32>
    %91 = vector.broadcast %90 : vector<1x128xf32> to vector<64x128xf32>
    %92 = arith.mulf %91, %82 : vector<64x128xf32>
    %93 = arith.addf %89, %92 : vector<64x128xf32>
    %c127_i32_44 = arith.constant 127 : i32
    %94 = tpu.dynamic_rotate %82 by %c127_i32_44 dim 1 : vector<64x128xf32>, i32 -> vector<64x128xf32>
    %cst_45 = arith.constant 0.000000e+00 : f32
    %95 = vector.broadcast %cst_45 : f32 to vector<64x128xf32>
    %96 = arith.select %15, %94, %95 : vector<64x128xi1>, vector<64x128xf32>
    %c8 = arith.constant 8 : index
    %c0_46 = arith.constant 0 : index
    %97 = vector.load %arg3[%c8, %c0_46] : memref<27x128xf32, #tpu.memory_space<vmem>>, vector<1x128xf32>
    %98 = vector.broadcast %97 : vector<1x128xf32> to vector<64x128xf32>
    %99 = arith.mulf %98, %96 : vector<64x128xf32>
    %100 = arith.addf %93, %99 : vector<64x128xf32>
    %c1_47 = arith.constant 1 : index
    %c0_48 = arith.constant 0 : index
    %c0_49 = arith.constant 0 : index
    %101 = vector.load %arg0[%c1_47, %c0_48, %c0_49] : memref<3x64x128xf32, #tpu.memory_space<vmem>>, vector<1x64x128xf32>
    %102 = vector.shape_cast %101 : vector<1x64x128xf32> to vector<64x128xf32>
    %c1_i32_50 = arith.constant 1 : i32
    %103 = tpu.dynamic_rotate %102 by %c1_i32_50 dim 0 : vector<64x128xf32>, i32 -> vector<64x128xf32>
    %cst_51 = arith.constant 0.000000e+00 : f32
    %104 = vector.broadcast %cst_51 : f32 to vector<64x128xf32>
    %105 = arith.select %3, %103, %104 : vector<64x128xi1>, vector<64x128xf32>
    %c1_i32_52 = arith.constant 1 : i32
    %106 = tpu.dynamic_rotate %105 by %c1_i32_52 dim 1 : vector<64x128xf32>, i32 -> vector<64x128xf32>
    %cst_53 = arith.constant 0.000000e+00 : f32
    %107 = vector.broadcast %cst_53 : f32 to vector<64x128xf32>
    %108 = arith.select %10, %106, %107 : vector<64x128xi1>, vector<64x128xf32>
    %c9 = arith.constant 9 : index
    %c0_54 = arith.constant 0 : index
    %109 = vector.load %arg3[%c9, %c0_54] : memref<27x128xf32, #tpu.memory_space<vmem>>, vector<1x128xf32>
    %110 = vector.broadcast %109 : vector<1x128xf32> to vector<64x128xf32>
    %111 = arith.mulf %110, %108 : vector<64x128xf32>
    %112 = arith.addf %100, %111 : vector<64x128xf32>
    %c10 = arith.constant 10 : index
    %c0_55 = arith.constant 0 : index
    %113 = vector.load %arg3[%c10, %c0_55] : memref<27x128xf32, #tpu.memory_space<vmem>>, vector<1x128xf32>
    %114 = vector.broadcast %113 : vector<1x128xf32> to vector<64x128xf32>
    %115 = arith.mulf %114, %105 : vector<64x128xf32>
    %116 = arith.addf %112, %115 : vector<64x128xf32>
    %c127_i32_56 = arith.constant 127 : i32
    %117 = tpu.dynamic_rotate %105 by %c127_i32_56 dim 1 : vector<64x128xf32>, i32 -> vector<64x128xf32>
    %cst_57 = arith.constant 0.000000e+00 : f32
    %118 = vector.broadcast %cst_57 : f32 to vector<64x128xf32>
    %119 = arith.select %15, %117, %118 : vector<64x128xi1>, vector<64x128xf32>
    %c11 = arith.constant 11 : index
    %c0_58 = arith.constant 0 : index
    %120 = vector.load %arg3[%c11, %c0_58] : memref<27x128xf32, #tpu.memory_space<vmem>>, vector<1x128xf32>
    %121 = vector.broadcast %120 : vector<1x128xf32> to vector<64x128xf32>
    %122 = arith.mulf %121, %119 : vector<64x128xf32>
    %123 = arith.addf %116, %122 : vector<64x128xf32>
    %c1_i32_59 = arith.constant 1 : i32
    %124 = tpu.dynamic_rotate %102 by %c1_i32_59 dim 1 : vector<64x128xf32>, i32 -> vector<64x128xf32>
    %cst_60 = arith.constant 0.000000e+00 : f32
    %125 = vector.broadcast %cst_60 : f32 to vector<64x128xf32>
    %126 = arith.select %10, %124, %125 : vector<64x128xi1>, vector<64x128xf32>
    %c12 = arith.constant 12 : index
    %c0_61 = arith.constant 0 : index
    %127 = vector.load %arg3[%c12, %c0_61] : memref<27x128xf32, #tpu.memory_space<vmem>>, vector<1x128xf32>
    %128 = vector.broadcast %127 : vector<1x128xf32> to vector<64x128xf32>
    %129 = arith.mulf %128, %126 : vector<64x128xf32>
    %130 = arith.addf %123, %129 : vector<64x128xf32>
    %c13 = arith.constant 13 : index
    %c0_62 = arith.constant 0 : index
    %131 = vector.load %arg3[%c13, %c0_62] : memref<27x128xf32, #tpu.memory_space<vmem>>, vector<1x128xf32>
    %132 = vector.broadcast %131 : vector<1x128xf32> to vector<64x128xf32>
    %133 = arith.mulf %132, %102 : vector<64x128xf32>
    %134 = arith.addf %130, %133 : vector<64x128xf32>
    %c127_i32_63 = arith.constant 127 : i32
    %135 = tpu.dynamic_rotate %102 by %c127_i32_63 dim 1 : vector<64x128xf32>, i32 -> vector<64x128xf32>
    %cst_64 = arith.constant 0.000000e+00 : f32
    %136 = vector.broadcast %cst_64 : f32 to vector<64x128xf32>
    %137 = arith.select %15, %135, %136 : vector<64x128xi1>, vector<64x128xf32>
    %c14 = arith.constant 14 : index
    %c0_65 = arith.constant 0 : index
    %138 = vector.load %arg3[%c14, %c0_65] : memref<27x128xf32, #tpu.memory_space<vmem>>, vector<1x128xf32>
    %139 = vector.broadcast %138 : vector<1x128xf32> to vector<64x128xf32>
    %140 = arith.mulf %139, %137 : vector<64x128xf32>
    %141 = arith.addf %134, %140 : vector<64x128xf32>
    %c63_i32_66 = arith.constant 63 : i32
    %142 = tpu.dynamic_rotate %102 by %c63_i32_66 dim 0 : vector<64x128xf32>, i32 -> vector<64x128xf32>
    %cst_67 = arith.constant 0.000000e+00 : f32
    %143 = vector.broadcast %cst_67 : f32 to vector<64x128xf32>
    %144 = arith.select %5, %142, %143 : vector<64x128xi1>, vector<64x128xf32>
    %c1_i32_68 = arith.constant 1 : i32
    %145 = tpu.dynamic_rotate %144 by %c1_i32_68 dim 1 : vector<64x128xf32>, i32 -> vector<64x128xf32>
    %cst_69 = arith.constant 0.000000e+00 : f32
    %146 = vector.broadcast %cst_69 : f32 to vector<64x128xf32>
    %147 = arith.select %10, %145, %146 : vector<64x128xi1>, vector<64x128xf32>
    %c15 = arith.constant 15 : index
    %c0_70 = arith.constant 0 : index
    %148 = vector.load %arg3[%c15, %c0_70] : memref<27x128xf32, #tpu.memory_space<vmem>>, vector<1x128xf32>
    %149 = vector.broadcast %148 : vector<1x128xf32> to vector<64x128xf32>
    %150 = arith.mulf %149, %147 : vector<64x128xf32>
    %151 = arith.addf %141, %150 : vector<64x128xf32>
    %c16 = arith.constant 16 : index
    %c0_71 = arith.constant 0 : index
    %152 = vector.load %arg3[%c16, %c0_71] : memref<27x128xf32, #tpu.memory_space<vmem>>, vector<1x128xf32>
    %153 = vector.broadcast %152 : vector<1x128xf32> to vector<64x128xf32>
    %154 = arith.mulf %153, %144 : vector<64x128xf32>
    %155 = arith.addf %151, %154 : vector<64x128xf32>
    %c127_i32_72 = arith.constant 127 : i32
    %156 = tpu.dynamic_rotate %144 by %c127_i32_72 dim 1 : vector<64x128xf32>, i32 -> vector<64x128xf32>
    %cst_73 = arith.constant 0.000000e+00 : f32
    %157 = vector.broadcast %cst_73 : f32 to vector<64x128xf32>
    %158 = arith.select %15, %156, %157 : vector<64x128xi1>, vector<64x128xf32>
    %c17 = arith.constant 17 : index
    %c0_74 = arith.constant 0 : index
    %159 = vector.load %arg3[%c17, %c0_74] : memref<27x128xf32, #tpu.memory_space<vmem>>, vector<1x128xf32>
    %160 = vector.broadcast %159 : vector<1x128xf32> to vector<64x128xf32>
    %161 = arith.mulf %160, %158 : vector<64x128xf32>
    %162 = arith.addf %155, %161 : vector<64x128xf32>
    %c2_75 = arith.constant 2 : index
    %c0_76 = arith.constant 0 : index
    %c0_77 = arith.constant 0 : index
    %163 = vector.load %arg0[%c2_75, %c0_76, %c0_77] : memref<3x64x128xf32, #tpu.memory_space<vmem>>, vector<1x64x128xf32>
    %164 = vector.shape_cast %163 : vector<1x64x128xf32> to vector<64x128xf32>
    %c1_i32_78 = arith.constant 1 : i32
    %165 = tpu.dynamic_rotate %164 by %c1_i32_78 dim 0 : vector<64x128xf32>, i32 -> vector<64x128xf32>
    %cst_79 = arith.constant 0.000000e+00 : f32
    %166 = vector.broadcast %cst_79 : f32 to vector<64x128xf32>
    %167 = arith.select %3, %165, %166 : vector<64x128xi1>, vector<64x128xf32>
    %c1_i32_80 = arith.constant 1 : i32
    %168 = tpu.dynamic_rotate %167 by %c1_i32_80 dim 1 : vector<64x128xf32>, i32 -> vector<64x128xf32>
    %cst_81 = arith.constant 0.000000e+00 : f32
    %169 = vector.broadcast %cst_81 : f32 to vector<64x128xf32>
    %170 = arith.select %10, %168, %169 : vector<64x128xi1>, vector<64x128xf32>
    %c18 = arith.constant 18 : index
    %c0_82 = arith.constant 0 : index
    %171 = vector.load %arg3[%c18, %c0_82] : memref<27x128xf32, #tpu.memory_space<vmem>>, vector<1x128xf32>
    %172 = vector.broadcast %171 : vector<1x128xf32> to vector<64x128xf32>
    %173 = arith.mulf %172, %170 : vector<64x128xf32>
    %174 = arith.addf %162, %173 : vector<64x128xf32>
    %c19 = arith.constant 19 : index
    %c0_83 = arith.constant 0 : index
    %175 = vector.load %arg3[%c19, %c0_83] : memref<27x128xf32, #tpu.memory_space<vmem>>, vector<1x128xf32>
    %176 = vector.broadcast %175 : vector<1x128xf32> to vector<64x128xf32>
    %177 = arith.mulf %176, %167 : vector<64x128xf32>
    %178 = arith.addf %174, %177 : vector<64x128xf32>
    %c127_i32_84 = arith.constant 127 : i32
    %179 = tpu.dynamic_rotate %167 by %c127_i32_84 dim 1 : vector<64x128xf32>, i32 -> vector<64x128xf32>
    %cst_85 = arith.constant 0.000000e+00 : f32
    %180 = vector.broadcast %cst_85 : f32 to vector<64x128xf32>
    %181 = arith.select %15, %179, %180 : vector<64x128xi1>, vector<64x128xf32>
    %c20 = arith.constant 20 : index
    %c0_86 = arith.constant 0 : index
    %182 = vector.load %arg3[%c20, %c0_86] : memref<27x128xf32, #tpu.memory_space<vmem>>, vector<1x128xf32>
    %183 = vector.broadcast %182 : vector<1x128xf32> to vector<64x128xf32>
    %184 = arith.mulf %183, %181 : vector<64x128xf32>
    %185 = arith.addf %178, %184 : vector<64x128xf32>
    %c1_i32_87 = arith.constant 1 : i32
    %186 = tpu.dynamic_rotate %164 by %c1_i32_87 dim 1 : vector<64x128xf32>, i32 -> vector<64x128xf32>
    %cst_88 = arith.constant 0.000000e+00 : f32
    %187 = vector.broadcast %cst_88 : f32 to vector<64x128xf32>
    %188 = arith.select %10, %186, %187 : vector<64x128xi1>, vector<64x128xf32>
    %c21 = arith.constant 21 : index
    %c0_89 = arith.constant 0 : index
    %189 = vector.load %arg3[%c21, %c0_89] : memref<27x128xf32, #tpu.memory_space<vmem>>, vector<1x128xf32>
    %190 = vector.broadcast %189 : vector<1x128xf32> to vector<64x128xf32>
    %191 = arith.mulf %190, %188 : vector<64x128xf32>
    %192 = arith.addf %185, %191 : vector<64x128xf32>
    %c22 = arith.constant 22 : index
    %c0_90 = arith.constant 0 : index
    %193 = vector.load %arg3[%c22, %c0_90] : memref<27x128xf32, #tpu.memory_space<vmem>>, vector<1x128xf32>
    %194 = vector.broadcast %193 : vector<1x128xf32> to vector<64x128xf32>
    %195 = arith.mulf %194, %164 : vector<64x128xf32>
    %196 = arith.addf %192, %195 : vector<64x128xf32>
    %c127_i32_91 = arith.constant 127 : i32
    %197 = tpu.dynamic_rotate %164 by %c127_i32_91 dim 1 : vector<64x128xf32>, i32 -> vector<64x128xf32>
    %cst_92 = arith.constant 0.000000e+00 : f32
    %198 = vector.broadcast %cst_92 : f32 to vector<64x128xf32>
    %199 = arith.select %15, %197, %198 : vector<64x128xi1>, vector<64x128xf32>
    %c23 = arith.constant 23 : index
    %c0_93 = arith.constant 0 : index
    %200 = vector.load %arg3[%c23, %c0_93] : memref<27x128xf32, #tpu.memory_space<vmem>>, vector<1x128xf32>
    %201 = vector.broadcast %200 : vector<1x128xf32> to vector<64x128xf32>
    %202 = arith.mulf %201, %199 : vector<64x128xf32>
    %203 = arith.addf %196, %202 : vector<64x128xf32>
    %c63_i32_94 = arith.constant 63 : i32
    %204 = tpu.dynamic_rotate %164 by %c63_i32_94 dim 0 : vector<64x128xf32>, i32 -> vector<64x128xf32>
    %cst_95 = arith.constant 0.000000e+00 : f32
    %205 = vector.broadcast %cst_95 : f32 to vector<64x128xf32>
    %206 = arith.select %5, %204, %205 : vector<64x128xi1>, vector<64x128xf32>
    %c1_i32_96 = arith.constant 1 : i32
    %207 = tpu.dynamic_rotate %206 by %c1_i32_96 dim 1 : vector<64x128xf32>, i32 -> vector<64x128xf32>
    %cst_97 = arith.constant 0.000000e+00 : f32
    %208 = vector.broadcast %cst_97 : f32 to vector<64x128xf32>
    %209 = arith.select %10, %207, %208 : vector<64x128xi1>, vector<64x128xf32>
    %c24 = arith.constant 24 : index
    %c0_98 = arith.constant 0 : index
    %210 = vector.load %arg3[%c24, %c0_98] : memref<27x128xf32, #tpu.memory_space<vmem>>, vector<1x128xf32>
    %211 = vector.broadcast %210 : vector<1x128xf32> to vector<64x128xf32>
    %212 = arith.mulf %211, %209 : vector<64x128xf32>
    %213 = arith.addf %203, %212 : vector<64x128xf32>
    %c25 = arith.constant 25 : index
    %c0_99 = arith.constant 0 : index
    %214 = vector.load %arg3[%c25, %c0_99] : memref<27x128xf32, #tpu.memory_space<vmem>>, vector<1x128xf32>
    %215 = vector.broadcast %214 : vector<1x128xf32> to vector<64x128xf32>
    %216 = arith.mulf %215, %206 : vector<64x128xf32>
    %217 = arith.addf %213, %216 : vector<64x128xf32>
    %c127_i32_100 = arith.constant 127 : i32
    %218 = tpu.dynamic_rotate %206 by %c127_i32_100 dim 1 : vector<64x128xf32>, i32 -> vector<64x128xf32>
    %cst_101 = arith.constant 0.000000e+00 : f32
    %219 = vector.broadcast %cst_101 : f32 to vector<64x128xf32>
    %220 = arith.select %15, %218, %219 : vector<64x128xi1>, vector<64x128xf32>
    %c26 = arith.constant 26 : index
    %c0_102 = arith.constant 0 : index
    %221 = vector.load %arg3[%c26, %c0_102] : memref<27x128xf32, #tpu.memory_space<vmem>>, vector<1x128xf32>
    %222 = vector.broadcast %221 : vector<1x128xf32> to vector<64x128xf32>
    %223 = arith.mulf %222, %220 : vector<64x128xf32>
    %224 = arith.addf %217, %223 : vector<64x128xf32>
    %c0_103 = arith.constant 0 : index
    %c0_104 = arith.constant 0 : index
    %225 = vector.load %arg4[%c0_103, %c0_104] : memref<1x128xf32, #tpu.memory_space<vmem>>, vector<1x128xf32>
    %226 = vector.broadcast %225 : vector<1x128xf32> to vector<64x128xf32>
    %227 = arith.addf %224, %226 : vector<64x128xf32>
    %228 = arith.mulf %227, %39 : vector<64x128xf32>
    %c0_105 = arith.constant 0 : index
    %c0_106 = arith.constant 0 : index
    %229 = vector.load %arg5[%c0_105, %c0_106] : memref<64x128xf32, #tpu.memory_space<vmem>>, vector<64x128xf32>
    tpu.vector_store %arg5[%c0_105, %c0_106], %228 {strides = array<i32>} : memref<64x128xf32, #tpu.memory_space<vmem>>, vector<64x128xf32>,
    return
  }
}

</mosaic_0001>

<bundles_post_ra>
// kernel: model_forward.1
= control target key start
LH: loop header
LB: loop body
LE: loop exit
PB: predicated region body
PF: predicated region fallthrough
CT: control target
= control target key end

     0   :  { %v20_v0 = vlaneseq  ;;  %s1313_s7 = smov 1   ;;  %s1314_s10 = smov 127   ;;  %s3144_s0 = inlined_call_operand.vmem [shape: f32[3,64,128], index: 0, kind: input, shape index: {}]   ;;  %s3145_s3 = inlined_call_operand.vmem [shape: f32[27,128], index: 3, kind: input, shape index: {}]   ;;  %s3146_s1 = inlined_call_operand.vmem [shape: f32[3,128], index: 1, kind: input, shape index: {}]   ;;  %s3147_s2 = inlined_call_operand.vmem [shape: f32[1,128], index: 2, kind: input, shape index: {}]   ;;  %s3148_s4 = inlined_call_operand.vmem [shape: f32[1,128], index: 4, kind: input, shape index: {}]   ;;  %s3149_s5 = inlined_call_operand.vmem [shape: f32[64,128], index: 5, kind: output, shape index: {}]  }
   0x1   :  { %v1348_v1 = vld [vmem:[%s3144_s0 + $0x8] sm:$0xff]  ;;  %v1353_v2 = vld [vmem:[%s3144_s0 + $0x10] sm:$0xff]  ;;  %v1363_v6 = vld [vmem:[%s3144_s0] sm:$0xff] }
   0x2   :  { %v1356_v3 = vshrl.u32 %v20_v0, 7  ;;  %v154_v4 = vrot.slane %v1348_v1, 7  ;;  %v155_v5 = vrot.slane %v1353_v2, 7  ;;  %v1368_v7 = vld [vmem:[%s3144_s0 + $0x38] sm:$0xff]  ;;  %v153_v9 = vrot.slane %v1363_v6, 7  ;;  %v1382_v11 = vld [vmem:[%s3144_s0 + $0x20] sm:$0xff] }
   0x3   :  { %v1373_v8 = vld [vmem:[%s3144_s0 + $0x18] sm:$0xff]  ;;  %v160_v10 = vrot.slane %v1368_v7, 7  ;;  %v157_v14 = vrot.slane %v1382_v11, 7  ;;  %v1393_v15 = vld [vmem:[%s3144_s0 + $0x28] sm:$0xff]  ;;  %v1415_v20 = vld [vmem:[%s3144_s0 + $0x30] sm:$0xff]  ;;  %v374_v27 = vrot.slane %v1363_v6, 1 }
   0x4   :  { %vm161_vm0 = vcmp.lt.s32.totalorder %v1356_v3, 1  ;;  %vm31_vm1 = vcmp.gt.s32.totalorder %v1356_v3, 0  ;;  %v156_v13 = vrot.slane %v1373_v8, 7  ;;  %v158_v19 = vrot.slane %v1393_v15, 7  ;;  %v1524_v37 = vld [vmem:[%s3145_s3 + $0x1] ss:$0 sm:$0xff] }
   0x5   :  { %v1386_v12 = vsel %vm161_vm0, %v154_v4, %v155_v5  ;;  %v169_v16 = vsel %vm161_vm0, %v160_v10, %v153_v9  ;;  %v1423_v22 = vsel %vm161_vm0, %v153_v9, %v154_v4  ;;  %v159_v24 = vrot.slane %v1415_v20, 7  ;;  %v1541_v41 = vld [vmem:[%s3145_s3] ss:$0 sm:$0xff]  ;;  %v1605_v63 = vld [vmem:[%s3145_s3 + $0x2] ss:$0 sm:$0xff] }
   0x6   :  { %182 = vrot.lane.b32.xlu1 %v1386_v12, %s1313_s7  ;;  %v1401_v17 = vsel %vm31_vm1, %v169_v16, 0.0  ;;  %v1405_v18 = vsel %vm161_vm0, %v156_v13, %v157_v14  ;;  %v1419_v21 = vsel %vm161_vm0, %v155_v5, %v156_v13  ;;  %v1427_v23 = vsel %vm161_vm0, %v157_v14, %v158_v19  ;;  %v1621_v14 = vld [vmem:[%s3144_s0 + $0x40] sm:$0xff]  ;;  %v1626_v16 = vld [vmem:[%s3144_s0 + $0x78] sm:$0xff] }
   0x7   :  { %178 = vrot.lane.b32.xlu0 %v1401_v17, %s1313_s7  ;;  %186 = vrot.lane.b32.xlu2 %v1405_v18, %s1313_s7  ;;  %v1438_v25 = vsel %vm161_vm0, %v159_v24, %v160_v10  ;;  %v1442_v26 = vsel %vm161_vm0, %v158_v19, %v159_v24  ;;  %v375_v28 = vrot.slane %v1348_v1, 1  ;;  %vm382_vm2 = vcmp.lt.s32.totalorder %v1356_v3, 7 }
   0x8   :  { %v376_v30 = vrot.slane %v1353_v2, 1  ;;  %v377_v31 = vrot.slane %v1373_v8, 1  ;;  %v30_v32 = vand.u32 127, %v20_v0  ;;  %v378_v34 = vrot.slane %v1382_v11, 1 }
   0x9   :  { %v1497_v29 = vsel %vm382_vm2, %v374_v27, %v375_v28  ;;  %v379_v38 = vrot.slane %v1393_v15, 1  ;;  %v380_v39 = vrot.slane %v1415_v20, 1  ;;  %v218_v42 = vmul.f32 %v1524_v37, %v1405_v18 }
   0xa   :  { %v1510_v33 = vsel %vm382_vm2, %v376_v30, %v377_v31  ;;  %v1515_v35 = vsel %vm382_vm2, %v375_v28, %v376_v30  ;;  %v1519_v36 = vsel %vm382_vm2, %v377_v31, %v378_v34  ;;  %vm47_vm3 = vcmp.ne.s32.totalorder %v30_v32, 0 }
   0xb   :  { %vm48_vm4 = vcmp.ne.s32.totalorder %v30_v32, 64  ;;  %v1547_v44 = vsel %vm382_vm2, %v379_v38, %v380_v39  ;;  %v381_v46 = vrot.slane %v1368_v7, 1  ;;  %v1555_v48 = vsel %vm382_vm2, %v378_v34, %v379_v38 }
   0xc   :  { %vm1534_vm5 = vmand %vm47_vm3, %vm48_vm4  ;;  %v1566_v51 = vadd.s32 56, %v1356_v3  ;;  %v219_v52 = vmul.f32 %v1524_v37, %v1427_v23  ;;  %vm50_vm7 = vcmp.ne.s32.totalorder %v30_v32, 63  ;;  %vm51_vm8 = vcmp.ne.s32.totalorder %v30_v32, 127 }
   0xd   :  { %v1559_v49 = vsel %vm382_vm2, %v380_v39, %v381_v46  ;;  %v390_v53 = vsel %vm382_vm2, %v381_v46, %v374_v27  ;;  %vm1594_vm9 = vmand %vm50_vm7, %vm51_vm8  ;;  %v216_v61 = vmul.f32 %v1524_v37, %v1386_v12  ;;  %v214_v5 = vmul.f32 %v1524_v37, %v1401_v17  ;;  %v1655_v39 = vld [vmem:[%s3144_s0 + $0x50] sm:$0xff] }
   0xe   :  { %184 = vrot.lane.b32.xlu1 %v1419_v21, %s1313_s7  ;;  %vm46_vm6 = vcmp.lt.s32.totalorder %v1566_v51, 63  ;;  %v501_v27 = vrot.slane %v1621_v14, 7  ;;  %v508_v28 = vrot.slane %v1626_v16, 7  ;;  %v217_v32 = vmul.f32 %v1524_v37, %v1419_v21 }
   0xf   :  { %180 = vrot.lane.b32.xlu0 %v1423_v22, %s1313_s7  ;;  %188 = vrot.lane.b32.xlu2 %v1427_v23, %s1313_s7  ;;  %v1582_v57 = vsel %vm46_vm6, %v390_v53, 0.0 }
  0x16   :  { %192 = vrot.lane.b32.xlu1 %v1438_v25, %s1313_s7 }
  0x17   :  { %190 = vrot.lane.b32.xlu0 %v1442_v26, %s1313_s7  ;;  %230 = vrot.lane.b32.xlu2 %v1401_v17, %s1314_s10 }
  0x1e   :  { %234 = vrot.lane.b32.xlu1 %v1386_v12, %s1314_s10 }
  0x1f   :  { %232 = vrot.lane.b32.xlu0 %v1423_v22, %s1314_s10  ;;  %236 = vrot.lane.b32.xlu2 %v1419_v21, %s1314_s10  ;;  %v215_v21 = vmul.f32 %v1524_v37, %v1423_v22  ;;  %v503_v22 = vrot.slane %v1655_v39, 7 }
  0x26   :  { %240 = vrot.lane.b32.xlu1 %v1427_v23, %s1314_s10  ;;  %v1635_v23 = vld [vmem:[%s3144_s0 + $0x48] sm:$0xff] }
  0x27   :  { %238 = vrot.lane.b32.xlu0 %v1405_v18, %s1314_s10  ;;  %242 = vrot.lane.b32.xlu2 %v1442_v26, %s1314_s10  ;;  %v502_v31 = vrot.slane %v1635_v23, 7 }
  0x2e   :  { %272 = vrot.lane.b32.xlu1 %v1363_v6, %s1313_s7 }
  0x2f   :  { %244 = vrot.lane.b32.xlu0 %v1438_v25, %s1314_s10  ;;  %274 = vrot.lane.b32.xlu2 %v1348_v1, %s1313_s7 }
  0x36   :  { %278 = vrot.lane.b32.xlu1 %v1373_v8, %s1313_s7 }
  0x37   :  { %276 = vrot.lane.b32.xlu0 %v1353_v2, %s1313_s7  ;;  %280 = vrot.lane.b32.xlu2 %v1382_v11, %s1313_s7 }
  0x3e   :  { %284 = vrot.lane.b32.xlu1 %v1415_v20, %s1313_s7 }
  0x3f   :  { %282 = vrot.lane.b32.xlu0 %v1393_v15, %s1313_s7  ;;  %286 = vrot.lane.b32.xlu2 %v1368_v7, %s1313_s7 }
  0x46   :  { %334 = vrot.lane.b32.xlu1 %v1348_v1, %s1314_s10 }
  0x47   :  { %332 = vrot.lane.b32.xlu0 %v1363_v6, %s1314_s10  ;;  %336 = vrot.lane.b32.xlu2 %v1353_v2, %s1314_s10 }
  0x4e   :  { %340 = vrot.lane.b32.xlu1 %v1382_v11, %s1314_s10 }
  0x4f   :  { %338 = vrot.lane.b32.xlu0 %v1373_v8, %s1314_s10  ;;  %342 = vrot.lane.b32.xlu2 %v1393_v15, %s1314_s10 }
  0x56   :  { %346 = vrot.lane.b32.xlu1 %v1368_v7, %s1314_s10 }
  0x57   :  { %344 = vrot.lane.b32.xlu0 %v1415_v20, %s1314_s10  ;;  %399 = vrot.lane.b32.xlu2 %v1497_v29, %s1313_s7 }
  0x5e   :  { %403 = vrot.lane.b32.xlu1 %v1510_v33, %s1313_s7 }
  0x5f   :  { %401 = vrot.lane.b32.xlu0 %v1515_v35, %s1313_s7  ;;  %405 = vrot.lane.b32.xlu2 %v1519_v36, %s1313_s7 }
  0x61   :  { %v187_v43 = vpop.permute.xlu2 %186 }
  0x62   :  { %v198_v45 = vsel %vm1534_vm5, %v187_v43, 0.0 }
  0x63   :  { %v208_v47 = vmul.f32 %v1541_v41, %v198_v45 }
  0x65   :  { %v1563_v50 = vadd.f32 %v218_v42, %v208_v47  ;;  %v516_v47 = vsel %vm161_vm0, %v508_v28, %v501_v27 }
  0x66   :  { %409 = vrot.lane.b32.xlu1 %v1547_v44, %s1313_s7 }
  0x67   :  { %407 = vrot.lane.b32.xlu0 %v1555_v48, %s1313_s7  ;;  %411 = vrot.lane.b32.xlu2 %v1559_v49, %s1313_s7 }
  0x69   :  { %v189_v54 = vpop.permute.xlu2 %188 }
  0x6a   :  { %v199_v55 = vsel %vm1534_vm5, %v189_v54, 0.0  ;;  %v1671_v54 = vsel %vm161_vm0, %v501_v27, %v502_v31 }
  0x6b   :  { %v209_v56 = vmul.f32 %v1541_v41, %v199_v55 }
  0x6d   :  { %v1586_v58 = vadd.f32 %v219_v52, %v209_v56 }
  0x6e   :  { %459 = vrot.lane.b32.xlu1 %v1497_v29, %s1314_s10 }
  0x6f   :  { %413 = vrot.lane.b32.xlu0 %v1582_v57, %s1313_s7  ;;  %461 = vrot.lane.b32.xlu2 %v1515_v35, %s1314_s10 }
  0x71   :  { %v231_v59 = vpop.permute.xlu2 %230 }
  0x72   :  { %v246_v4 = vsel %vm1594_vm9, %v231_v59, 0.0  ;;  %v1678_v59 = vld [vmem:[%s3144_s0 + $0x58] sm:$0xff] }
  0x73   :  { %v256_v19 = vmul.f32 %v1605_v63, %v246_v4 }
  0x76   :  { %465 = vrot.lane.b32.xlu1 %v1519_v36, %s1314_s10 }
  0x77   :  { %463 = vrot.lane.b32.xlu0 %v1510_v33, %s1314_s10  ;;  %467 = vrot.lane.b32.xlu2 %v1555_v48, %s1314_s10 }
  0x78   :  { %v183_v62 = vpop.permute.xlu1 %182 }
  0x79   :  { %v196_v0 = vsel %vm1534_vm5, %v183_v62, 0.0  ;;  %v179_v10 = vpop.permute.xlu0 %178  ;;  %v237_v12 = vpop.permute.xlu2 %236  ;;  %v1687_v62 = vsel %vm31_vm1, %v516_v47, 0.0 }
  0x7a   :  { %v206_v9 = vmul.f32 %v1541_v41, %v196_v0  ;;  %v194_v13 = vsel %vm1534_vm5, %v179_v10, 0.0  ;;  %v249_v30 = vsel %vm1594_vm9, %v237_v12, 0.0  ;;  %v1691_v0 = vsel %vm161_vm0, %v502_v31, %v503_v22 }
  0x7b   :  { %v204_v17 = vmul.f32 %v1541_v41, %v194_v13  ;;  %v259_v46 = vmul.f32 %v1605_v63, %v249_v30  ;;  %v221_v12 = vmul.f32 %v1524_v37, %v1438_v25  ;;  %v220_v25 = vmul.f32 %v1524_v37, %v1442_v26  ;;  %v1729_v26 = vld [vmem:[%s3144_s0 + $0x70] sm:$0xff] }
  0x7c   :  { %v1628_v18 = vadd.f32 %v216_v61, %v206_v9  ;;  %v1683_v61 = vld [vmem:[%s3144_s0 + $0x60] sm:$0xff]  ;;  %v504_v9 = vrot.slane %v1678_v59, 7 }
  0x7d   :  { %v222_v24 = vadd.f32 %v214_v5, %v204_v17  ;;  %v505_v10 = vrot.slane %v1683_v61, 7  ;;  %v1708_v17 = vld [vmem:[%s3144_s0 + $0x68] sm:$0xff] }
  0x7e   :  { %471 = vrot.lane.b32.xlu1 %v1559_v49, %s1314_s10  ;;  %v1733_v37 = vsel %vm161_vm0, %v503_v22, %v504_v9  ;;  %v1749_v22 = vld [vmem:[%s3145_s3 + $0x3] ss:$0 sm:$0xff] }
  0x7f   :  { %v1646_v34 = vadd.f32 %v256_v19, %v222_v24  ;;  %469 = vrot.lane.b32.xlu0 %v1547_v44, %s1314_s10  ;;  %473 = vrot.lane.b32.xlu2 %v1582_v57, %s1314_s10 }
  0x80   :  { %v185_v38 = vpop.permute.xlu1 %184 }
  0x81   :  { %v197_v42 = vsel %vm1534_vm5, %v185_v38, 0.0  ;;  %v181_v45 = vpop.permute.xlu0 %180  ;;  %v243_v52 = vpop.permute.xlu2 %242  ;;  %v1721_v38 = vsel %vm161_vm0, %v504_v9, %v505_v10 }
  0x82   :  { %v207_v43 = vmul.f32 %v1541_v41, %v197_v42  ;;  %v195_v53 = vsel %vm1534_vm5, %v181_v45, 0.0  ;;  %v252_v24 = vsel %vm1594_vm9, %v243_v52, 0.0  ;;  %v506_v42 = vrot.slane %v1708_v17, 7 }
  0x83   :  { %v205_v56 = vmul.f32 %v1541_v41, %v195_v53  ;;  %v262_v45 = vmul.f32 %v1605_v63, %v252_v24 }
  0x84   :  { %v225_v55 = vadd.f32 %v217_v32, %v207_v43 }
  0x85   :  { %v223_v4 = vadd.f32 %v215_v21, %v205_v56 }
  0x86   :  { %v1693_v5 = vadd.f32 %v259_v46, %v225_v55  ;;  %527 = vrot.lane.b32.xlu1 %v1671_v54, %s1313_s7  ;;  %v1737_v46 = vsel %vm161_vm0, %v505_v10, %v506_v42 }
  0x87   :  { %525 = vrot.lane.b32.xlu0 %v1687_v62, %s1313_s7  ;;  %529 = vrot.lane.b32.xlu2 %v1691_v0, %s1313_s7 }
  0x88   :  { %v193_v13 = vpop.permute.xlu1 %192 }
  0x89   :  { %v201_v19 = vsel %vm1534_vm5, %v193_v13, 0.0  ;;  %v191_v30 = vpop.permute.xlu0 %190  ;;  %v275_v31 = vpop.permute.xlu2 %274 }
  0x8a   :  { %v211_v27 = vmul.f32 %v1541_v41, %v201_v19  ;;  %v200_v32 = vsel %vm1534_vm5, %v191_v30, 0.0  ;;  %v289_v56 = vsel %vm1534_vm5, %v275_v31, 0.0 }
  0x8b   :  { %v210_v43 = vmul.f32 %v1541_v41, %v200_v32  ;;  %v507_v41 = vrot.slane %v1729_v26, 7 }
  0x8c   :  { %v229_v21 = vadd.f32 %v221_v12, %v211_v27  ;;  %v299_v27 = vmul.f32 %v1749_v22, %v289_v56 }
  0x8d   :  { %v228_v47 = vadd.f32 %v220_v25, %v210_v43  ;;  %v1764_v19 = vsel %vm161_vm0, %v507_v41, %v508_v28  ;;  %v1771_v30 = vsel %vm161_vm0, %v506_v42, %v507_v41 }
  0x8e   :  { %533 = vrot.lane.b32.xlu1 %v1721_v38, %s1313_s7 }
  0x8f   :  { %v1742_v52 = vadd.f32 %v262_v45, %v228_v47  ;;  %531 = vrot.lane.b32.xlu0 %v1733_v37, %s1313_s7  ;;  %535 = vrot.lane.b32.xlu2 %v1737_v46, %s1313_s7 }
  0x90   :  { %v235_v53 = vpop.permute.xlu1 %234 }
  0x91   :  { %v248_v55 = vsel %vm1594_vm9, %v235_v53, 0.0  ;;  %v233_v10 = vpop.permute.xlu0 %232  ;;  %v281_v12 = vpop.permute.xlu2 %280 }
  0x92   :  { %v258_v9 = vmul.f32 %v1605_v63, %v248_v55  ;;  %v247_v13 = vsel %vm1594_vm9, %v233_v10, 0.0  ;;  %v292_v42 = vsel %vm1534_vm5, %v281_v12, 0.0 }
  0x93   :  { %v257_v25 = vmul.f32 %v1605_v63, %v247_v13  ;;  %v302_v55 = vmul.f32 %v1749_v22, %v292_v42 }
  0x94   :  { %v266_v24 = vadd.f32 %v258_v9, %v1628_v18 }
  0x95   :  { %v265_v31 = vadd.f32 %v257_v25, %v223_v4 }
  0x96   :  { %539 = vrot.lane.b32.xlu1 %v1764_v19, %s1313_s7 }
  0x97   :  { %v1775_v32 = vadd.f32 %v299_v27, %v265_v31  ;;  %537 = vrot.lane.b32.xlu0 %v1771_v30, %s1313_s7  ;;  %585 = vrot.lane.b32.xlu2 %v1687_v62, %s1314_s10 }
  0x98   :  { %v241_v28 = vpop.permute.xlu1 %240 }
  0x99   :  { %v251_v18 = vsel %vm1594_vm9, %v241_v28, 0.0  ;;  %v239_v43 = vpop.permute.xlu0 %238  ;;  %v287_v45 = vpop.permute.xlu2 %286 }
  0x9a   :  { %v261_v4 = vmul.f32 %v1605_v63, %v251_v18  ;;  %v250_v47 = vsel %vm1594_vm9, %v239_v43, 0.0  ;;  %v295_v12 = vsel %vm1534_vm5, %v287_v45, 0.0 }
  0x9b   :  { %v260_v53 = vmul.f32 %v1605_v63, %v250_v47  ;;  %v305_v18 = vmul.f32 %v1749_v22, %v295_v12  ;;  %v1829_v47 = vld [vmem:[%s3145_s3 + $0x5] ss:$0 sm:$0xff] }
  0x9c   :  { %v269_v41 = vadd.f32 %v261_v4, %v1586_v58 }
  0x9d   :  { %v268_v56 = vadd.f32 %v260_v53, %v1563_v50 }
  0x9e   :  { %589 = vrot.lane.b32.xlu1 %v1691_v0, %s1314_s10 }
  0x9f   :  { %v1794_v9 = vadd.f32 %v302_v55, %v268_v56  ;;  %587 = vrot.lane.b32.xlu0 %v1671_v54, %s1314_s10  ;;  %591 = vrot.lane.b32.xlu2 %v1733_v37, %s1314_s10 }
  0xa0   :  { %v273_v10 = vpop.permute.xlu1 %272 }
  0xa1   :  { %v288_v58 = vsel %vm1534_vm5, %v273_v10, 0.0  ;;  %v245_v13 = vpop.permute.xlu0 %244  ;;  %v337_v25 = vpop.permute.xlu2 %336 }
  0xa2   :  { %v298_v50 = vmul.f32 %v1749_v22, %v288_v58  ;;  %v253_v27 = vsel %vm1594_vm9, %v245_v13, 0.0  ;;  %v350_v56 = vsel %vm1594_vm9, %v337_v25, 0.0 }
  0xa3   :  { %v263_v28 = vmul.f32 %v1605_v63, %v253_v27  ;;  %v360_v13 = vmul.f32 %v1829_v47, %v350_v56 }
  0xa4   :  { %v306_v31 = vadd.f32 %v298_v50, %v1646_v34 }
  0xa5   :  { %v271_v42 = vadd.f32 %v263_v28, %v229_v21  ;;  %v1824_v21 = vld [vmem:[%s3145_s3 + $0x4] ss:$0 sm:$0xff] }
  0xa6   :  { %595 = vrot.lane.b32.xlu1 %v1737_v46, %s1314_s10  ;;  %v318_v12 = vmul.f32 %v1824_v21, %v1353_v2 }
  0xa7   :  { %v1812_v4 = vadd.f32 %v305_v18, %v271_v42  ;;  %593 = vrot.lane.b32.xlu0 %v1721_v38, %s1314_s10  ;;  %597 = vrot.lane.b32.xlu2 %v1771_v30, %s1314_s10 }
  0xa8   :  { %v279_v43 = vpop.permute.xlu1 %278 }
  0xa9   :  { %v291_v34 = vsel %vm1534_vm5, %v279_v43, 0.0  ;;  %v277_v45 = vpop.permute.xlu0 %276  ;;  %v343_v53 = vpop.permute.xlu2 %342 }
  0xaa   :  { %v301_v63 = vmul.f32 %v1749_v22, %v291_v34  ;;  %v290_v55 = vsel %vm1534_vm5, %v277_v45, 0.0  ;;  %v353_v43 = vsel %vm1594_vm9, %v343_v53, 0.0  ;;  %v321_v45 = vmul.f32 %v1824_v21, %v1393_v15  ;;  %v1873_v15 = vld [vmem:[%s3145_s3 + $0x6] ss:$0 sm:$0xff]  ;;  %v1884_v53 = vld [vmem:[%s3145_s3 + $0x7] ss:$0 sm:$0xff] }
  0xab   :  { %v300_v58 = vmul.f32 %v1749_v22, %v290_v55  ;;  %v363_v56 = vmul.f32 %v1829_v47, %v353_v43  ;;  %v443_v43 = vmul.f32 %v1884_v53, %v1497_v29 }
  0xac   :  { %v309_v10 = vadd.f32 %v301_v63, %v1693_v5 }
  0xad   :  { %v308_v50 = vadd.f32 %v300_v58, %v266_v24  ;;  %v317_v58 = vmul.f32 %v1824_v21, %v1348_v1 }
  0xae   :  { %627 = vrot.lane.b32.xlu1 %v1621_v14, %s1313_s7 }
  0xaf   :  { %v326_v27 = vadd.f32 %v318_v12, %v308_v50  ;;  %599 = vrot.lane.b32.xlu0 %v1764_v19, %s1314_s10  ;;  %629 = vrot.lane.b32.xlu2 %v1635_v23, %s1313_s7  ;;  %v325_v50 = vadd.f32 %v317_v58, %v1775_v32  ;;  %v320_v32 = vmul.f32 %v1824_v21, %v1382_v11 }
  0xb0   :  { %v285_v28 = vpop.permute.xlu1 %284 }
  0xb1   :  { %v294_v5 = vsel %vm1534_vm5, %v285_v28, 0.0  ;;  %v1848_v25 = vadd.f32 %v360_v13, %v326_v27  ;;  %v283_v24 = vpop.permute.xlu0 %282  ;;  %v400_v18 = vpop.permute.xlu2 %399  ;;  %v328_v58 = vadd.f32 %v320_v32, %v1794_v9 }
  0xb2   :  { %v304_v2 = vmul.f32 %v1749_v22, %v294_v5  ;;  %v293_v42 = vsel %vm1534_vm5, %v283_v24, 0.0  ;;  %v415_v1 = vsel %vm1534_vm5, %v400_v18, 0.0 }
  0xb3   :  { %v303_v63 = vmul.f32 %v1749_v22, %v293_v42  ;;  %v316_v22 = vmul.f32 %v1824_v21, %v1363_v6  ;;  %v425_v42 = vmul.f32 %v1873_v15, %v415_v1 }
  0xb4   :  { %v1856_v34 = vadd.f32 %v304_v2, %v1742_v52 }
  0xb5   :  { %v311_v55 = vadd.f32 %v303_v63, %v269_v41  ;;  %v324_v24 = vadd.f32 %v316_v22, %v306_v31  ;;  %v319_v31 = vmul.f32 %v1824_v21, %v1373_v8 }
  0xb6   :  { %633 = vrot.lane.b32.xlu1 %v1678_v59, %s1313_s7 }
  0xb7   :  { %v329_v12 = vadd.f32 %v321_v45, %v311_v55  ;;  %631 = vrot.lane.b32.xlu0 %v1655_v39, %s1313_s7  ;;  %635 = vrot.lane.b32.xlu2 %v1683_v61, %s1313_s7  ;;  %v327_v1 = vadd.f32 %v319_v31, %v309_v10  ;;  %v322_v10 = vmul.f32 %v1824_v21, %v1415_v20 }
  0xb8   :  { %v335_v52 = vpop.permute.xlu1 %334 }
  0xb9   :  { %v349_v41 = vsel %vm1594_vm9, %v335_v52, 0.0  ;;  %v1886_v6 = vadd.f32 %v363_v56, %v329_v12  ;;  %v333_v27 = vpop.permute.xlu0 %332  ;;  %v406_v28 = vpop.permute.xlu2 %405 }
  0xba   :  { %v359_v13 = vmul.f32 %v1829_v47, %v349_v41  ;;  %v348_v5 = vsel %vm1594_vm9, %v333_v27, 0.0  ;;  %v418_v56 = vsel %vm1534_vm5, %v406_v28, 0.0  ;;  %v446_v27 = vmul.f32 %v1884_v53, %v1519_v36 }
  0xbb   :  { %v358_v18 = vmul.f32 %v1829_v47, %v348_v5  ;;  %v323_v28 = vmul.f32 %v1824_v21, %v1368_v7 }
  0xbc   :  { %v1892_v2 = vadd.f32 %v359_v13, %v325_v50  ;;  %v428_v13 = vmul.f32 %v1873_v15, %v418_v56 }
  0xbd   :  { %v366_v63 = vadd.f32 %v358_v18, %v324_v24 }
  0xbe   :  { %639 = vrot.lane.b32.xlu1 %v1729_v26, %s1313_s7 }
  0xbf   :  { %v433_v45 = vadd.f32 %v425_v42, %v366_v63  ;;  %637 = vrot.lane.b32.xlu0 %v1708_v17, %s1313_s7  ;;  %641 = vrot.lane.b32.xlu2 %v1626_v16, %s1313_s7  ;;  %v331_v42 = vadd.f32 %v323_v28, %v1812_v4  ;;  %v449_v4 = vmul.f32 %v1884_v53, %v1559_v49 }
  0xc0   :  { %v341_v55 = vpop.permute.xlu1 %340  ;;  %v445_v49 = vmul.f32 %v1884_v53, %v1510_v33  ;;  %v444_v33 = vmul.f32 %v1884_v53, %v1515_v35  ;;  %v731_v35 = vrot.slane %v1655_v39, 1 }
  0xc1   :  { %v352_v29 = vsel %vm1594_vm9, %v341_v55, 0.0  ;;  %v339_v12 = vpop.permute.xlu0 %338  ;;  %v412_v52 = vpop.permute.xlu2 %411  ;;  %v1914_v22 = vadd.f32 %v443_v43, %v433_v45  ;;  %v330_v45 = vadd.f32 %v322_v10, %v1856_v34  ;;  %v729_v34 = vrot.slane %v1621_v14, 1 }
  0xc2   :  { %v362_v11 = vmul.f32 %v1829_v47, %v352_v29  ;;  %v351_v8 = vsel %vm1594_vm9, %v339_v12, 0.0  ;;  %v421_v18 = vsel %vm1534_vm5, %v412_v52, 0.0  ;;  %v1966_v52 = vld [vmem:[%s3145_s3 + $0x8] ss:$0 sm:$0xff] }
  0xc3   :  { %v361_v50 = vmul.f32 %v1829_v47, %v351_v8  ;;  %v431_v31 = vmul.f32 %v1873_v15, %v421_v18 }
  0xc4   :  { %v1918_v41 = vadd.f32 %v362_v11, %v328_v58 }
  0xc5   :  { %v369_v9 = vadd.f32 %v361_v50, %v327_v1 }
  0xc6   :  { %689 = vrot.lane.b32.xlu1 %v1635_v23, %s1314_s10 }
  0xc7   :  { %v436_v5 = vadd.f32 %v428_v13, %v369_v9  ;;  %687 = vrot.lane.b32.xlu0 %v1621_v14, %s1314_s10  ;;  %691 = vrot.lane.b32.xlu2 %v1655_v39, %s1314_s10 }
  0xc8   :  { %v347_v24 = vpop.permute.xlu1 %346 }
  0xc9   :  { %v355_v36 = vsel %vm1594_vm9, %v347_v24, 0.0  ;;  %v345_v43 = vpop.permute.xlu0 %344  ;;  %v462_v63 = vpop.permute.xlu2 %461  ;;  %v1940_v32 = vadd.f32 %v446_v27, %v436_v5  ;;  %v730_v27 = vrot.slane %v1635_v23, 1 }
  0xca   :  { %v365_v7 = vmul.f32 %v1829_v47, %v355_v36  ;;  %v354_v20 = vsel %vm1594_vm9, %v345_v43, 0.0  ;;  %v476_v13 = vsel %vm1594_vm9, %v462_v63, 0.0 }
  0xcb   :  { %v364_v55 = vmul.f32 %v1829_v47, %v354_v20  ;;  %v1983_v5 = vsel %vm382_vm2, %v729_v34, %v730_v27  ;;  %v486_v10 = vmul.f32 %v1966_v52, %v476_v13 }
  0xcc   :  { %v1944_v21 = vadd.f32 %v365_v7, %v331_v42  ;;  %v448_v7 = vmul.f32 %v1884_v53, %v1547_v44  ;;  %v447_v44 = vmul.f32 %v1884_v53, %v1555_v48 }
  0xcd   :  { %v372_v29 = vadd.f32 %v364_v55, %v330_v45 }
  0xce   :  { %695 = vrot.lane.b32.xlu1 %v1683_v61, %s1314_s10 }
  0xcf   :  { %v439_v56 = vadd.f32 %v431_v31, %v372_v29  ;;  %693 = vrot.lane.b32.xlu0 %v1678_v59, %s1314_s10  ;;  %697 = vrot.lane.b32.xlu2 %v1708_v17, %s1314_s10  ;;  %v733_v29 = vrot.slane %v1683_v61, 1 }
  0xd0   :  { %v404_v58 = vpop.permute.xlu1 %403 }
  0xd1   :  { %v417_v47 = vsel %vm1534_vm5, %v404_v58, 0.0  ;;  %v402_v12 = vpop.permute.xlu0 %401  ;;  %v468_v8 = vpop.permute.xlu2 %467  ;;  %v1968_v1 = vadd.f32 %v449_v4, %v439_v56 }
  0xd2   :  { %v427_v11 = vmul.f32 %v1873_v15, %v417_v47  ;;  %v416_v50 = vsel %vm1534_vm5, %v402_v12, 0.0  ;;  %v479_v31 = vsel %vm1594_vm9, %v468_v8, 0.0  ;;  %v2019_v47 = vsel %vm382_vm2, %v730_v27, %v731_v35 }
  0xd3   :  { %v426_v28 = vmul.f32 %v1873_v15, %v416_v50  ;;  %v489_v12 = vmul.f32 %v1966_v52, %v479_v31  ;;  %v735_v8 = vrot.slane %v1729_v26, 1 }
  0xd4   :  { %v435_v9 = vadd.f32 %v427_v11, %v1848_v25  ;;  %v732_v25 = vrot.slane %v1678_v59, 1 }
  0xd5   :  { %v434_v24 = vadd.f32 %v426_v28, %v1892_v2 }
  0xd6   :  { %701 = vrot.lane.b32.xlu1 %v1626_v16, %s1314_s10  ;;  %v1989_v36 = vadd.f32 %v445_v49, %v435_v9  ;;  %v2010_v4 = vsel %vm382_vm2, %v731_v35, %v732_v25  ;;  %v2023_v49 = vsel %vm382_vm2, %v732_v25, %v733_v29  ;;  %v736_v25 = vrot.slane %v1626_v16, 1 }
  0xd7   :  { %v452_v18 = vadd.f32 %v444_v33, %v434_v24  ;;  %699 = vrot.lane.b32.xlu0 %v1729_v26, %s1314_s10  ;;  %753 = vrot.lane.b32.xlu2 %v1983_v5, %s1313_s7 }
  0xd8   :  { %v410_v42 = vpop.permute.xlu1 %409 }
  0xd9   :  { %v420_v2 = vsel %vm1534_vm5, %v410_v42, 0.0  ;;  %v2001_v43 = vadd.f32 %v486_v10, %v452_v18  ;;  %v408_v20 = vpop.permute.xlu0 %407  ;;  %v474_v45 = vpop.permute.xlu2 %473  ;;  %v450_v18 = vmul.f32 %v1884_v53, %v1582_v57  ;;  %v2072_v53 = vld [vmem:[%s3145_s3 + $0x9] ss:$0 sm:$0xff] }
  0xda   :  { %v430_v63 = vmul.f32 %v1873_v15, %v420_v2  ;;  %v419_v55 = vsel %vm1534_vm5, %v408_v20, 0.0  ;;  %v482_v10 = vsel %vm1594_vm9, %v474_v45, 0.0  ;;  %v2083_v45 = vld [vmem:[%s3145_s3 + $0xa] ss:$0 sm:$0xff] }
  0xdb   :  { %v429_v58 = vmul.f32 %v1873_v15, %v419_v55  ;;  %v492_v16 = vmul.f32 %v1966_v52, %v482_v10 }
  0xdc   :  { %v438_v56 = vadd.f32 %v430_v63, %v1886_v6  ;;  %v734_v6 = vrot.slane %v1708_v17, 1  ;;  %v2061_v63 = vsel %vm382_vm2, %v735_v8, %v736_v25 }
  0xdd   :  { %v437_v11 = vadd.f32 %v429_v58, %v1918_v41 }
  0xde   :  { %757 = vrot.lane.b32.xlu1 %v2010_v4, %s1313_s7  ;;  %v456_v48 = vadd.f32 %v448_v7, %v438_v56  ;;  %v2046_v35 = vsel %vm382_vm2, %v734_v6, %v735_v8  ;;  %v2057_v7 = vsel %vm382_vm2, %v733_v29, %v734_v6 }
  0xdf   :  { %v455_v50 = vadd.f32 %v447_v44, %v437_v11  ;;  %755 = vrot.lane.b32.xlu0 %v2019_v47, %s1313_s7  ;;  %759 = vrot.lane.b32.xlu2 %v2023_v49, %s1313_s7  ;;  %v744_v44 = vsel %vm382_vm2, %v736_v25, %v729_v34 }
  0xe0   :  { %v460_v13 = vpop.permute.xlu1 %459  ;;  %v2101_v8 = vsel %vm46_vm6, %v744_v44, 0.0  ;;  %v2158_v44 = vld [vmem:[%s3144_s0 + $0xb8] sm:$0xff] }
  0xe1   :  { %v475_v41 = vsel %vm1594_vm9, %v460_v13, 0.0  ;;  %v2037_v27 = vadd.f32 %v489_v12, %v455_v50  ;;  %v414_v9 = vpop.permute.xlu0 %413  ;;  %v530_v28 = vpop.permute.xlu2 %529  ;;  %v571_v50 = vmul.f32 %v2083_v45, %v1691_v0 }
  0xe2   :  { %v485_v33 = vmul.f32 %v1966_v52, %v475_v41  ;;  %v422_v24 = vsel %vm1534_vm5, %v414_v9, 0.0 }
  0xe3   :  { %v432_v2 = vmul.f32 %v1873_v15, %v422_v24 }
  0xe4   :  { %v2052_v42 = vadd.f32 %v485_v33, %v1914_v22 }
  0xe5   :  { %v440_v20 = vadd.f32 %v432_v2, %v1944_v21  ;;  %v543_v21 = vsel %vm1534_vm5, %v530_v28, 0.0  ;;  %v574_v2 = vmul.f32 %v2083_v45, %v1737_v46 }
  0xe6   :  { %763 = vrot.lane.b32.xlu1 %v2046_v35, %s1313_s7  ;;  %v553_v6 = vmul.f32 %v2072_v53, %v543_v21  ;;  %v2147_v21 = vld [vmem:[%s3144_s0 + $0x80] sm:$0xff] }
  0xe7   :  { %v458_v57 = vadd.f32 %v450_v18, %v440_v20  ;;  %761 = vrot.lane.b32.xlu0 %v2057_v7, %s1313_s7  ;;  %765 = vrot.lane.b32.xlu2 %v2061_v63, %s1313_s7 }
  0xe8   :  { %v466_v15 = vpop.permute.xlu1 %465 }
  0xe9   :  { %v478_v22 = vsel %vm1594_vm9, %v466_v15, 0.0  ;;  %v2085_v55 = vadd.f32 %v492_v16, %v458_v57  ;;  %v464_v29 = vpop.permute.xlu0 %463  ;;  %v536_v56 = vpop.permute.xlu2 %535  ;;  %v2142_v15 = vld [vmem:[%s3145_s3 + $0xb] ss:$0 sm:$0xff] }
  0xea   :  { %v488_v31 = vmul.f32 %v1966_v52, %v478_v22  ;;  %v477_v58 = vsel %vm1594_vm9, %v464_v29, 0.0  ;;  %v546_v33 = vsel %vm1534_vm5, %v536_v56, 0.0  ;;  %v569_v56 = vmul.f32 %v2083_v45, %v1687_v62 }
  0xeb   :  { %v487_v12 = vmul.f32 %v1966_v52, %v477_v58  ;;  %v556_v18 = vmul.f32 %v2072_v53, %v546_v33  ;;  %v862_v62 = vrot.slane %v2158_v44, 7 }
  0xec   :  { %v2095_v11 = vadd.f32 %v488_v31, %v1940_v32 }
  0xed   :  { %v495_v34 = vadd.f32 %v487_v12, %v1989_v36 }
  0xee   :  { %813 = vrot.lane.b32.xlu1 %v1983_v5, %s1314_s10 }
  0xef   :  { %v561_v13 = vadd.f32 %v553_v6, %v495_v34  ;;  %767 = vrot.lane.b32.xlu0 %v2101_v8, %s1313_s7  ;;  %815 = vrot.lane.b32.xlu2 %v2019_v47, %s1314_s10  ;;  %v2167_v6 = vld [vmem:[%s3144_s0 + $0x88] sm:$0xff] }
  0xf0   :  { %v472_v32 = vpop.permute.xlu1 %471 }
  0xf1   :  { %v481_v41 = vsel %vm1594_vm9, %v472_v32, 0.0  ;;  %v470_v36 = vpop.permute.xlu0 %469  ;;  %v586_v9 = vpop.permute.xlu2 %585  ;;  %v2117_v28 = vadd.f32 %v571_v50, %v561_v13  ;;  %v855_v50 = vrot.slane %v2147_v21, 7 }
  0xf2   :  { %v491_v0 = vmul.f32 %v1966_v52, %v481_v41  ;;  %v480_v24 = vsel %vm1594_vm9, %v470_v36, 0.0  ;;  %v573_v36 = vmul.f32 %v2083_v45, %v1721_v38 }
  0xf3   :  { %v490_v25 = vmul.f32 %v1966_v52, %v480_v24 }
  0xf4   :  { %v2122_v10 = vadd.f32 %v491_v0, %v1968_v1  ;;  %v570_v1 = vmul.f32 %v2083_v45, %v1671_v54  ;;  %v601_v54 = vsel %vm1594_vm9, %v586_v9, 0.0 }
  0xf5   :  { %v498_v20 = vadd.f32 %v490_v25, %v456_v48  ;;  %v611_v13 = vmul.f32 %v2142_v15, %v601_v54 }
  0xf6   :  { %819 = vrot.lane.b32.xlu1 %v2023_v49, %s1314_s10 }
  0xf7   :  { %v564_v16 = vadd.f32 %v556_v18, %v498_v20  ;;  %817 = vrot.lane.b32.xlu0 %v2010_v4, %s1314_s10  ;;  %821 = vrot.lane.b32.xlu2 %v2057_v7, %s1314_s10  ;;  %v870_v18 = vsel %vm161_vm0, %v862_v62, %v855_v50 }
  0xf8   :  { %v528_v57 = vpop.permute.xlu1 %527 }
  0xf9   :  { %v542_v52 = vsel %vm1534_vm5, %v528_v57, 0.0  ;;  %v526_v48 = vpop.permute.xlu0 %525  ;;  %v592_v22 = vpop.permute.xlu2 %591  ;;  %v2149_v31 = vadd.f32 %v574_v2, %v564_v16 }
  0xfa   :  { %v552_v46 = vmul.f32 %v2072_v53, %v542_v52  ;;  %v541_v29 = vsel %vm1534_vm5, %v526_v48, 0.0  ;;  %v604_v16 = vsel %vm1594_vm9, %v592_v22, 0.0  ;;  %v572_v52 = vmul.f32 %v2083_v45, %v1733_v37  ;;  %v2214_v48 = vld [vmem:[%s3144_s0 + $0x98] sm:$0xff]  ;;  %v2219_v22 = vld [vmem:[%s3144_s0 + $0xa0] sm:$0xff] }
  0xfb   :  { %v551_v12 = vmul.f32 %v2072_v53, %v541_v29  ;;  %v2223_v29 = vsel %vm31_vm1, %v870_v18, 0.0  ;;  %v614_v54 = vmul.f32 %v2142_v15, %v604_v16 }
  0xfc   :  { %v560_v58 = vadd.f32 %v552_v46, %v2001_v43  ;;  %v856_v43 = vrot.slane %v2167_v6, 7 }
  0xfd   :  { %v559_v34 = vadd.f32 %v551_v12, %v2052_v42  ;;  %v2185_v42 = vld [vmem:[%s3144_s0 + $0x90] sm:$0xff]  ;;  %v859_v12 = vrot.slane %v2219_v22, 7 }
  0xfe   :  { %825 = vrot.lane.b32.xlu1 %v2061_v63, %s1314_s10  ;;  %v2175_v32 = vadd.f32 %v570_v1, %v560_v58  ;;  %v2204_v38 = vsel %vm161_vm0, %v855_v50, %v856_v43  ;;  %v857_v57 = vrot.slane %v2185_v42, 7  ;;  %v858_v58 = vrot.slane %v2214_v48, 7 }
  0xff   :  { %v577_v41 = vadd.f32 %v569_v56, %v559_v34  ;;  %823 = vrot.lane.b32.xlu0 %v2046_v35, %s1314_s10  ;;  %827 = vrot.lane.b32.xlu2 %v2101_v8, %s1314_s10 }
 0x100   :  { %v534_v33 = vpop.permute.xlu1 %533  ;;  %v2227_v37 = vsel %vm161_vm0, %v856_v43, %v857_v57  ;;  %v576_v43 = vmul.f32 %v2083_v45, %v1764_v19  ;;  %v2257_v18 = vsel %vm161_vm0, %v858_v58, %v859_v12  ;;  %v575_v19 = vmul.f32 %v2083_v45, %v1771_v30 }
 0x101   :  { %v545_v0 = vsel %vm1534_vm5, %v534_v33, 0.0  ;;  %v2191_v9 = vadd.f32 %v611_v13, %v577_v41  ;;  %v532_v25 = vpop.permute.xlu0 %531  ;;  %v598_v2 = vpop.permute.xlu2 %597 }
 0x102   :  { %v555_v24 = vmul.f32 %v2072_v53, %v545_v0  ;;  %v544_v20 = vsel %vm1534_vm5, %v532_v25, 0.0  ;;  %v607_v25 = vsel %vm1594_vm9, %v598_v2, 0.0  ;;  %v2271_v2 = vsel %vm161_vm0, %v857_v57, %v858_v58 }
 0x103   :  { %v554_v46 = vmul.f32 %v2072_v53, %v544_v20  ;;  %v617_v30 = vmul.f32 %v2142_v15, %v607_v25 }
 0x104   :  { %v563_v1 = vadd.f32 %v555_v24, %v2037_v27 }
 0x105   :  { %v562_v27 = vadd.f32 %v554_v46, %v2095_v11  ;;  %v2242_v11 = vld [vmem:[%s3144_s0 + $0xa8] sm:$0xff] }
 0x106   :  { %881 = vrot.lane.b32.xlu1 %v2204_v38, %s1313_s7  ;;  %v581_v56 = vadd.f32 %v573_v36, %v563_v1  ;;  %v860_v20 = vrot.slane %v2242_v11, 7  ;;  %v2267_v1 = vld [vmem:[%s3144_s0 + $0xb0] sm:$0xff] }
 0x107   :  { %v580_v50 = vadd.f32 %v572_v52, %v562_v27  ;;  %879 = vrot.lane.b32.xlu0 %v2223_v29, %s1313_s7  ;;  %883 = vrot.lane.b32.xlu2 %v2227_v37, %s1313_s7  ;;  %v861_v45 = vrot.slane %v2267_v1, 7 }
 0x108   :  { %v540_v34 = vpop.permute.xlu1 %539  ;;  %v2275_v46 = vsel %vm161_vm0, %v859_v12, %v860_v20 }
 0x109   :  { %v548_v13 = vsel %vm1534_vm5, %v540_v34, 0.0  ;;  %v2248_v41 = vadd.f32 %v614_v54, %v580_v50  ;;  %v538_v0 = vpop.permute.xlu0 %537  ;;  %v630_v36 = vpop.permute.xlu2 %629  ;;  %v2287_v54 = vld [vmem:[%s3145_s3 + $0xc] ss:$0 sm:$0xff]  ;;  %v2311_v25 = vsel %vm161_vm0, %v860_v20, %v861_v45 }
 0x10a   :  { %v558_v33 = vmul.f32 %v2072_v53, %v548_v13  ;;  %v547_v24 = vsel %vm1534_vm5, %v538_v0, 0.0  ;;  %v644_v58 = vsel %vm1534_vm5, %v630_v36, 0.0 }
 0x10b   :  { %v557_v52 = vmul.f32 %v2072_v53, %v547_v24  ;;  %v654_v36 = vmul.f32 %v2287_v54, %v644_v58 }
 0x10c   :  { %v566_v16 = vadd.f32 %v558_v33, %v2085_v55  ;;  %v2304_v33 = vsel %vm161_vm0, %v861_v45, %v862_v62 }
 0x10d   :  { %v565_v27 = vadd.f32 %v557_v52, %v2122_v10 }
 0x10e   :  { %887 = vrot.lane.b32.xlu1 %v2257_v18, %s1313_s7  ;;  %v584_v53 = vadd.f32 %v576_v43, %v566_v16 }
 0x10f   :  { %v583_v55 = vadd.f32 %v575_v19, %v565_v27  ;;  %885 = vrot.lane.b32.xlu0 %v2271_v2, %s1313_s7  ;;  %889 = vrot.lane.b32.xlu2 %v2275_v46, %s1313_s7 }
 0x110   :  { %v590_v57 = vpop.permute.xlu1 %589 }
 0x111   :  { %v603_v10 = vsel %vm1594_vm9, %v590_v57, 0.0  ;;  %v2295_v12 = vadd.f32 %v617_v30, %v583_v55  ;;  %v588_v34 = vpop.permute.xlu0 %587  ;;  %v636_v13 = vpop.permute.xlu2 %635 }
 0x112   :  { %v613_v50 = vmul.f32 %v2142_v15, %v603_v10  ;;  %v602_v43 = vsel %vm1594_vm9, %v588_v34, 0.0  ;;  %v647_v20 = vsel %vm1534_vm5, %v636_v13, 0.0 }
 0x113   :  { %v612_v24 = vmul.f32 %v2142_v15, %v602_v43  ;;  %v657_v57 = vmul.f32 %v2287_v54, %v647_v20 }
 0x114   :  { %v621_v0 = vadd.f32 %v613_v50, %v2117_v28 }
 0x115   :  { %v620_v19 = vadd.f32 %v612_v24, %v2175_v32 }
 0x116   :  { %893 = vrot.lane.b32.xlu1 %v2304_v33, %s1313_s7 }
 0x117   :  { %v2316_v16 = vadd.f32 %v654_v36, %v620_v19  ;;  %891 = vrot.lane.b32.xlu0 %v2311_v25, %s1313_s7  ;;  %939 = vrot.lane.b32.xlu2 %v2223_v29, %s1314_s10 }
 0x118   :  { %v596_v62 = vpop.permute.xlu1 %595 }
 0x119   :  { %v606_v28 = vsel %vm1594_vm9, %v596_v62, 0.0  ;;  %v594_v52 = vpop.permute.xlu0 %593  ;;  %v642_v27 = vpop.permute.xlu2 %641 }
 0x11a   :  { %v616_v32 = vmul.f32 %v2142_v15, %v606_v28  ;;  %v605_v30 = vsel %vm1594_vm9, %v594_v52, 0.0  ;;  %v650_v34 = vsel %vm1534_vm5, %v642_v27, 0.0  ;;  %v2369_v27 = vld [vmem:[%s3145_s3 + $0xe] ss:$0 sm:$0xff] }
 0x11b   :  { %v615_v55 = vmul.f32 %v2142_v15, %v605_v30  ;;  %v660_v62 = vmul.f32 %v2287_v54, %v650_v34 }
 0x11c   :  { %v624_v45 = vadd.f32 %v616_v32, %v2149_v31 }
 0x11d   :  { %v623_v10 = vadd.f32 %v615_v55, %v581_v56 }
 0x11e   :  { %943 = vrot.lane.b32.xlu1 %v2227_v37, %s1314_s10 }
 0x11f   :  { %v2334_v58 = vadd.f32 %v657_v57, %v623_v10  ;;  %941 = vrot.lane.b32.xlu0 %v2204_v38, %s1314_s10  ;;  %945 = vrot.lane.b32.xlu2 %v2271_v2, %s1314_s10 }
 0x120   :  { %v628_v50 = vpop.permute.xlu1 %627 }
 0x121   :  { %v643_v31 = vsel %vm1534_vm5, %v628_v50, 0.0  ;;  %v600_v13 = vpop.permute.xlu0 %599  ;;  %v692_v43 = vpop.permute.xlu2 %691 }
 0x122   :  { %v653_v56 = vmul.f32 %v2287_v54, %v643_v31  ;;  %v608_v24 = vsel %vm1594_vm9, %v600_v13, 0.0  ;;  %v705_v57 = vsel %vm1594_vm9, %v692_v43, 0.0 }
 0x123   :  { %v618_v19 = vmul.f32 %v2142_v15, %v608_v24 }
 0x124   :  { %v661_v36 = vadd.f32 %v653_v56, %v2191_v9  ;;  %v715_v56 = vmul.f32 %v2369_v27, %v705_v57 }
 0x125   :  { %v626_v28 = vadd.f32 %v618_v19, %v584_v53  ;;  %v2364_v53 = vld [vmem:[%s3145_s3 + $0xd] ss:$0 sm:$0xff] }
 0x126   :  { %949 = vrot.lane.b32.xlu1 %v2275_v46, %s1314_s10  ;;  %v673_v31 = vmul.f32 %v2364_v53, %v1655_v39  ;;  %v672_v57 = vmul.f32 %v2364_v53, %v1635_v23 }
 0x127   :  { %v2352_v20 = vadd.f32 %v660_v62, %v626_v28  ;;  %947 = vrot.lane.b32.xlu0 %v2257_v18, %s1314_s10  ;;  %951 = vrot.lane.b32.xlu2 %v2311_v25, %s1314_s10 }
 0x128   :  { %v634_v32 = vpop.permute.xlu1 %633 }
 0x129   :  { %v646_v9 = vsel %vm1534_vm5, %v634_v32, 0.0  ;;  %v632_v52 = vpop.permute.xlu0 %631  ;;  %v698_v30 = vpop.permute.xlu2 %697 }
 0x12a   :  { %v656_v15 = vmul.f32 %v2287_v54, %v646_v9  ;;  %v645_v55 = vsel %vm1534_vm5, %v632_v52, 0.0  ;;  %v708_v28 = vsel %vm1594_vm9, %v698_v30, 0.0  ;;  %v2424_v30 = vld [vmem:[%s3145_s3 + $0x10] ss:$0 sm:$0xff] }
 0x12b   :  { %v655_v50 = vmul.f32 %v2287_v54, %v645_v55  ;;  %v718_v55 = vmul.f32 %v2369_v27, %v708_v28 }
 0x12c   :  { %v664_v10 = vadd.f32 %v656_v15, %v2248_v41  ;;  %v676_v15 = vmul.f32 %v2364_v53, %v1708_v17  ;;  %v2413_v17 = vld [vmem:[%s3145_s3 + $0xf] ss:$0 sm:$0xff] }
 0x12d   :  { %v663_v34 = vadd.f32 %v655_v50, %v621_v0 }
 0x12e   :  { %981 = vrot.lane.b32.xlu1 %v2147_v21, %s1313_s7 }
 0x12f   :  { %v681_v13 = vadd.f32 %v673_v31, %v663_v34  ;;  %953 = vrot.lane.b32.xlu0 %v2304_v33, %s1314_s10  ;;  %983 = vrot.lane.b32.xlu2 %v2167_v6, %s1313_s7  ;;  %v680_v31 = vadd.f32 %v672_v57, %v2316_v16  ;;  %v675_v16 = vmul.f32 %v2364_v53, %v1683_v61 }
 0x130   :  { %v640_v24 = vpop.permute.xlu1 %639 }
 0x131   :  { %v649_v41 = vsel %vm1534_vm5, %v640_v24, 0.0  ;;  %v2388_v43 = vadd.f32 %v715_v56, %v681_v13  ;;  %v638_v0 = vpop.permute.xlu0 %637  ;;  %v754_v19 = vpop.permute.xlu2 %753 }
 0x132   :  { %v659_v39 = vmul.f32 %v2287_v54, %v649_v41  ;;  %v648_v62 = vsel %vm1534_vm5, %v638_v0, 0.0  ;;  %v769_v23 = vsel %vm1534_vm5, %v754_v19, 0.0 }
 0x133   :  { %v658_v9 = vmul.f32 %v2287_v54, %v648_v62  ;;  %v671_v54 = vmul.f32 %v2364_v53, %v1621_v14  ;;  %v779_v19 = vmul.f32 %v2413_v17, %v769_v23  ;;  %v797_v62 = vmul.f32 %v2424_v30, %v1983_v5 }
 0x134   :  { %v2396_v32 = vadd.f32 %v659_v39, %v2295_v12 }
 0x135   :  { %v666_v52 = vadd.f32 %v658_v9, %v624_v45  ;;  %v679_v39 = vadd.f32 %v671_v54, %v661_v36  ;;  %v674_v36 = vmul.f32 %v2364_v53, %v1678_v59 }
 0x136   :  { %987 = vrot.lane.b32.xlu1 %v2214_v48, %s1313_s7 }
 0x137   :  { %v684_v50 = vadd.f32 %v676_v15, %v666_v52  ;;  %985 = vrot.lane.b32.xlu0 %v2185_v42, %s1313_s7  ;;  %989 = vrot.lane.b32.xlu2 %v2219_v22, %s1313_s7 }
 0x138   :  { %v690_v12 = vpop.permute.xlu1 %689 }
 0x139   :  { %v704_v45 = vsel %vm1594_vm9, %v690_v12, 0.0  ;;  %v2426_v14 = vadd.f32 %v718_v55, %v684_v50  ;;  %v688_v56 = vpop.permute.xlu0 %687  ;;  %v760_v13 = vpop.permute.xlu2 %759  ;;  %v683_v55 = vadd.f32 %v675_v16, %v2334_v58 }
 0x13a   :  { %v714_v34 = vmul.f32 %v2369_v27, %v704_v45  ;;  %v703_v24 = vsel %vm1594_vm9, %v688_v56, 0.0  ;;  %v772_v52 = vsel %vm1534_vm5, %v760_v13, 0.0  ;;  %v682_v45 = vadd.f32 %v674_v36, %v664_v10  ;;  %v2469_v56 = vld [vmem:[%s3144_s0 + $0x78] sm:$0xff] }
 0x13b   :  { %v713_v0 = vmul.f32 %v2369_v27, %v703_v24  ;;  %v678_v13 = vmul.f32 %v2469_v56, %v2364_v53 }
 0x13c   :  { %v2432_v41 = vadd.f32 %v714_v34, %v680_v31  ;;  %v782_v31 = vmul.f32 %v2413_v17, %v772_v52  ;;  %v800_v34 = vmul.f32 %v2424_v30, %v2023_v49  ;;  %v677_v49 = vmul.f32 %v2364_v53, %v1729_v26 }
 0x13d   :  { %v721_v28 = vadd.f32 %v713_v0, %v679_v39 }
 0x13e   :  { %993 = vrot.lane.b32.xlu1 %v2267_v1, %s1313_s7 }
 0x13f   :  { %v787_v9 = vadd.f32 %v779_v19, %v721_v28  ;;  %991 = vrot.lane.b32.xlu0 %v2242_v11, %s1313_s7  ;;  %995 = vrot.lane.b32.xlu2 %v2158_v44, %s1313_s7  ;;  %v686_v19 = vadd.f32 %v678_v13, %v2352_v20  ;;  %v803_v20 = vmul.f32 %v2424_v30, %v2061_v63 }
 0x140   :  { %v696_v15 = vpop.permute.xlu1 %695  ;;  %v799_v63 = vmul.f32 %v2424_v30, %v2010_v4  ;;  %v798_v4 = vmul.f32 %v2424_v30, %v2019_v47  ;;  %v1085_v47 = vrot.slane %v2185_v42, 1 }
 0x141   :  { %v707_v5 = vsel %vm1594_vm9, %v696_v15, 0.0  ;;  %v694_v57 = vpop.permute.xlu0 %693  ;;  %v766_v50 = vpop.permute.xlu2 %765  ;;  %v2454_v12 = vadd.f32 %v797_v62, %v787_v9  ;;  %v685_v15 = vadd.f32 %v677_v49, %v2396_v32  ;;  %v1083_v32 = vrot.slane %v2147_v21, 1 }
 0x142   :  { %v717_v61 = vmul.f32 %v2369_v27, %v707_v5  ;;  %v706_v59 = vsel %vm1594_vm9, %v694_v57, 0.0  ;;  %v775_v0 = vsel %vm1534_vm5, %v766_v50, 0.0 }
 0x143   :  { %v716_v23 = vmul.f32 %v2369_v27, %v706_v59  ;;  %v785_v5 = vmul.f32 %v2413_v17, %v775_v0  ;;  %v2511_v59 = vld [vmem:[%s3145_s3 + $0x11] ss:$0 sm:$0xff] }
 0x144   :  { %v2458_v54 = vadd.f32 %v717_v61, %v683_v55 }
 0x145   :  { %v724_v58 = vadd.f32 %v716_v23, %v682_v45 }
 0x146   :  { %1043 = vrot.lane.b32.xlu1 %v2167_v6, %s1314_s10 }
 0x147   :  { %v790_v10 = vadd.f32 %v782_v31, %v724_v58  ;;  %1041 = vrot.lane.b32.xlu0 %v2147_v21, %s1314_s10  ;;  %1045 = vrot.lane.b32.xlu2 %v2185_v42, %s1314_s10  ;;  %v1084_v58 = vrot.slane %v2167_v6, 1 }
 0x148   :  { %v702_v24 = vpop.permute.xlu1 %701 }
 0x149   :  { %v710_v39 = vsel %vm1594_vm9, %v702_v24, 0.0  ;;  %v700_v28 = vpop.permute.xlu0 %699  ;;  %v816_v16 = vpop.permute.xlu2 %815  ;;  %v2485_v9 = vadd.f32 %v800_v34, %v790_v10  ;;  %v2528_v24 = vsel %vm382_vm2, %v1083_v32, %v1084_v58 }
 0x14a   :  { %v720_v62 = vmul.f32 %v2369_v27, %v710_v39  ;;  %v709_v26 = vsel %vm1594_vm9, %v700_v28, 0.0  ;;  %v830_v34 = vsel %vm1594_vm9, %v816_v16, 0.0  ;;  %v802_v28 = vmul.f32 %v2424_v30, %v2046_v35 }
 0x14b   :  { %v719_v36 = vmul.f32 %v2369_v27, %v709_v26  ;;  %v840_v39 = vmul.f32 %v2511_v59, %v830_v34  ;;  %v801_v35 = vmul.f32 %v2424_v30, %v2057_v7 }
 0x14c   :  { %v2489_v53 = vadd.f32 %v720_v62, %v686_v19 }
 0x14d   :  { %v727_v52 = vadd.f32 %v719_v36, %v685_v15 }
 0x14e   :  { %1049 = vrot.lane.b32.xlu1 %v2219_v22, %s1314_s10 }
 0x14f   :  { %v793_v55 = vadd.f32 %v785_v5, %v727_v52  ;;  %1047 = vrot.lane.b32.xlu0 %v2214_v48, %s1314_s10  ;;  %1051 = vrot.lane.b32.xlu2 %v2242_v11, %s1314_s10 }
 0x150   :  { %v758_v61 = vpop.permute.xlu1 %757 }
 0x151   :  { %v771_v27 = vsel %vm1534_vm5, %v758_v61, 0.0  ;;  %v756_v50 = vpop.permute.xlu0 %755  ;;  %v822_v45 = vpop.permute.xlu2 %821  ;;  %v2513_v23 = vadd.f32 %v803_v20, %v793_v55  ;;  %v1087_v55 = vrot.slane %v2219_v22, 1 }
 0x152   :  { %v781_v57 = vmul.f32 %v2413_v17, %v771_v27  ;;  %v770_v31 = vsel %vm1534_vm5, %v756_v50, 0.0  ;;  %v833_v20 = vsel %vm1594_vm9, %v822_v45, 0.0 }
 0x153   :  { %v780_v10 = vmul.f32 %v2413_v17, %v770_v31  ;;  %v843_v45 = vmul.f32 %v2511_v59, %v833_v20  ;;  %v1089_v31 = vrot.slane %v2267_v1, 1 }
 0x154   :  { %v789_v13 = vadd.f32 %v781_v57, %v2388_v43  ;;  %v1086_v43 = vrot.slane %v2214_v48, 1 }
 0x155   :  { %v788_v49 = vadd.f32 %v780_v10, %v2432_v41 }
 0x156   :  { %1055 = vrot.lane.b32.xlu1 %v2158_v44, %s1314_s10  ;;  %v2534_v0 = vadd.f32 %v799_v63, %v789_v13  ;;  %v2555_v52 = vsel %vm382_vm2, %v1085_v47, %v1086_v43  ;;  %v2564_v63 = vsel %vm382_vm2, %v1084_v58, %v1085_v47  ;;  %v2568_v57 = vsel %vm382_vm2, %v1086_v43, %v1087_v55 }
 0x157   :  { %v806_v19 = vadd.f32 %v798_v4, %v788_v49  ;;  %1053 = vrot.lane.b32.xlu0 %v2267_v1, %s1314_s10  ;;  %1107 = vrot.lane.b32.xlu2 %v2528_v24, %s1313_s7 }
 0x158   :  { %v764_v62 = vpop.permute.xlu1 %763 }
 0x159   :  { %v774_v41 = vsel %vm1534_vm5, %v764_v62, 0.0  ;;  %v2546_v16 = vadd.f32 %v840_v39, %v806_v19  ;;  %v762_v15 = vpop.permute.xlu0 %761  ;;  %v828_v36 = vpop.permute.xlu2 %827  ;;  %v1090_v19 = vrot.slane %v2158_v44, 1  ;;  %v804_v62 = vmul.f32 %v2424_v30, %v2101_v8 }
 0x15a   :  { %v784_v26 = vmul.f32 %v2413_v17, %v774_v41  ;;  %v773_v5 = vsel %vm1534_vm5, %v762_v15, 0.0  ;;  %v836_v47 = vsel %vm1594_vm9, %v828_v36, 0.0 }
 0x15b   :  { %v783_v27 = vmul.f32 %v2413_v17, %v773_v5  ;;  %v2604_v15 = vsel %vm382_vm2, %v1089_v31, %v1090_v19  ;;  %v846_v5 = vmul.f32 %v2511_v59, %v836_v47 }
 0x15c   :  { %v792_v61 = vadd.f32 %v784_v26, %v2426_v14  ;;  %v1088_v14 = vrot.slane %v2242_v11, 1 }
 0x15d   :  { %v791_v50 = vadd.f32 %v783_v27, %v2458_v54 }
 0x15e   :  { %1111 = vrot.lane.b32.xlu1 %v2555_v52, %s1313_s7  ;;  %v810_v7 = vadd.f32 %v802_v28, %v792_v61  ;;  %v2591_v43 = vsel %vm382_vm2, %v1088_v14, %v1089_v31  ;;  %v2600_v26 = vsel %vm382_vm2, %v1087_v55, %v1088_v14  ;;  %v1098_v61 = vsel %vm382_vm2, %v1090_v19, %v1083_v32 }
 0x15f   :  { %v809_v34 = vadd.f32 %v801_v35, %v791_v50  ;;  %1109 = vrot.lane.b32.xlu0 %v2564_v63, %s1313_s7  ;;  %1113 = vrot.lane.b32.xlu2 %v2568_v57, %s1313_s7 }
 0x160   :  { %v814_v58 = vpop.permute.xlu1 %813 }
 0x161   :  { %v829_v54 = vsel %vm1594_vm9, %v814_v58, 0.0  ;;  %v2582_v4 = vadd.f32 %v843_v45, %v809_v34  ;;  %v768_v10 = vpop.permute.xlu0 %767  ;;  %v884_v49 = vpop.permute.xlu2 %883  ;;  %v2642_v34 = vsel %vm46_vm6, %v1098_v61, 0.0 }
 0x162   :  { %v839_v13 = vmul.f32 %v2511_v59, %v829_v54  ;;  %v776_v39 = vsel %vm1534_vm5, %v768_v10, 0.0 }
 0x163   :  { %v786_v28 = vmul.f32 %v2413_v17, %v776_v39  ;;  %v2615_v17 = vld [vmem:[%s3145_s3 + $0x12] ss:$0 sm:$0xff] }
 0x164   :  { %v847_v41 = vadd.f32 %v839_v13, %v2454_v12  ;;  %v897_v12 = vsel %vm1534_vm5, %v884_v49, 0.0 }
 0x165   :  { %v794_v36 = vadd.f32 %v786_v28, %v2489_v53  ;;  %v2626_v53 = vld [vmem:[%s3145_s3 + $0x13] ss:$0 sm:$0xff]  ;;  %v907_v31 = vmul.f32 %v2615_v17, %v897_v12 }
 0x166   :  { %1117 = vrot.lane.b32.xlu1 %v2591_v43, %s1313_s7  ;;  %v925_v58 = vmul.f32 %v2626_v53, %v2227_v37 }
 0x167   :  { %v812_v8 = vadd.f32 %v804_v62, %v794_v36  ;;  %1115 = vrot.lane.b32.xlu0 %v2600_v26, %s1313_s7  ;;  %1119 = vrot.lane.b32.xlu2 %v2604_v15, %s1313_s7  ;;  %v928_v62 = vmul.f32 %v2626_v53, %v2275_v46 }
 0x168   :  { %v820_v44 = vpop.permute.xlu1 %819 }
 0x169   :  { %v832_v30 = vsel %vm1594_vm9, %v820_v44, 0.0  ;;  %v2628_v20 = vadd.f32 %v846_v5, %v812_v8  ;;  %v818_v35 = vpop.permute.xlu0 %817  ;;  %v890_v27 = vpop.permute.xlu2 %889  ;;  %v2681_v8 = vld [vmem:[%s3145_s3 + $0x14] ss:$0 sm:$0xff] }
 0x16a   :  { %v842_v55 = vmul.f32 %v2511_v59, %v832_v30  ;;  %v831_v50 = vsel %vm1594_vm9, %v818_v35, 0.0  ;;  %v900_v54 = vsel %vm1534_vm5, %v890_v27, 0.0  ;;  %v923_v35 = vmul.f32 %v2626_v53, %v2223_v29 }
 0x16b   :  { %v841_v14 = vmul.f32 %v2511_v59, %v831_v50  ;;  %v910_v19 = vmul.f32 %v2615_v17, %v900_v54 }
 0x16c   :  { %v850_v45 = vadd.f32 %v842_v55, %v2485_v9 }
 0x16d   :  { %v849_v3 = vadd.f32 %v841_v14, %v2534_v0 }
 0x16e   :  { %1167 = vrot.lane.b32.xlu1 %v2528_v24, %s1314_s10 }
 0x16f   :  { %v915_v32 = vadd.f32 %v907_v31, %v849_v3  ;;  %1121 = vrot.lane.b32.xlu0 %v2642_v34, %s1313_s7  ;;  %1169 = vrot.lane.b32.xlu2 %v2564_v63, %s1314_s10 }
 0x170   :  { %v826_v9 = vpop.permute.xlu1 %825 }
 0x171   :  { %v835_v51 = vsel %vm1594_vm9, %v826_v9, 0.0  ;;  %v824_v0 = vpop.permute.xlu0 %823  ;;  %v940_v13 = vpop.permute.xlu2 %939  ;;  %v2658_v10 = vadd.f32 %v925_v58, %v915_v32 }
 0x172   :  { %v845_v37 = vmul.f32 %v2511_v59, %v835_v51  ;;  %v834_v49 = vsel %vm1594_vm9, %v824_v0, 0.0  ;;  %v955_v55 = vsel %vm1594_vm9, %v940_v13, 0.0 }
 0x173   :  { %v844_v47 = vmul.f32 %v2511_v59, %v834_v49  ;;  %v965_v50 = vmul.f32 %v2681_v8, %v955_v55 }
 0x174   :  { %v853_v39 = vadd.f32 %v845_v37, %v2513_v23  ;;  %v924_v23 = vmul.f32 %v2626_v53, %v2204_v38  ;;  %v926_v37 = vmul.f32 %v2626_v53, %v2271_v2 }
 0x175   :  { %v852_v28 = vadd.f32 %v844_v47, %v810_v7 }
 0x176   :  { %1173 = vrot.lane.b32.xlu1 %v2568_v57, %s1314_s10 }
 0x177   :  { %v918_v36 = vadd.f32 %v910_v19, %v852_v28  ;;  %1171 = vrot.lane.b32.xlu0 %v2555_v52, %s1314_s10  ;;  %1175 = vrot.lane.b32.xlu2 %v2600_v26, %s1314_s10 }
 0x178   :  { %v882_v5 = vpop.permute.xlu1 %881 }
 0x179   :  { %v896_v59 = vsel %vm1534_vm5, %v882_v5, 0.0  ;;  %v880_v7 = vpop.permute.xlu0 %879  ;;  %v946_v44 = vpop.permute.xlu2 %945  ;;  %v936_v30 = vadd.f32 %v928_v62, %v918_v36  ;;  %v930_v36 = vmul.f32 %v2626_v53, %v2304_v33 }
 0x17a   :  { %v906_v46 = vmul.f32 %v2615_v17, %v896_v59  ;;  %v895_v12 = vsel %vm1534_vm5, %v880_v7, 0.0  ;;  %v958_v54 = vsel %vm1594_vm9, %v946_v44, 0.0 }
 0x17b   :  { %v905_v61 = vmul.f32 %v2615_v17, %v895_v12 }
 0x17c   :  { %v914_v38 = vadd.f32 %v906_v46, %v2546_v16  ;;  %v927_v16 = vmul.f32 %v2626_v53, %v2257_v18  ;;  %v968_v18 = vmul.f32 %v2681_v8, %v958_v54  ;;  %v929_v46 = vmul.f32 %v2626_v53, %v2311_v25 }
 0x17d   :  { %v913_v27 = vadd.f32 %v905_v61, %v847_v41 }
 0x17e   :  { %1179 = vrot.lane.b32.xlu1 %v2604_v15, %s1314_s10  ;;  %v2694_v14 = vadd.f32 %v924_v23, %v914_v38 }
 0x17f   :  { %v931_v31 = vadd.f32 %v923_v35, %v913_v27  ;;  %1177 = vrot.lane.b32.xlu0 %v2591_v43, %s1314_s10  ;;  %1181 = vrot.lane.b32.xlu2 %v2642_v34, %s1314_s10 }
 0x180   :  { %v888_v58 = vpop.permute.xlu1 %887 }
 0x181   :  { %v899_v29 = vsel %vm1534_vm5, %v888_v58, 0.0  ;;  %v973_v41 = vadd.f32 %v965_v50, %v931_v31  ;;  %v886_v32 = vpop.permute.xlu0 %885  ;;  %v952_v9 = vpop.permute.xlu2 %951 }
 0x182   :  { %v909_v3 = vmul.f32 %v2615_v17, %v899_v29  ;;  %v898_v51 = vsel %vm1534_vm5, %v886_v32, 0.0  ;;  %v961_v23 = vsel %vm1594_vm9, %v952_v9, 0.0 }
 0x183   :  { %v908_v13 = vmul.f32 %v2615_v17, %v898_v51  ;;  %v971_v12 = vmul.f32 %v2681_v8, %v961_v23 }
 0x184   :  { %v917_v0 = vadd.f32 %v909_v3, %v2582_v4 }
 0x185   :  { %v916_v49 = vadd.f32 %v908_v13, %v850_v45  ;;  %v2766_v13 = vld [vmem:[%s3145_s3 + $0x15] ss:$0 sm:$0xff] }
 0x186   :  { %v2714_v47 = vadd.f32 %v927_v16, %v917_v0 }
 0x187   :  { %v934_v19 = vadd.f32 %v926_v37, %v916_v49 }
 0x188   :  { %v894_v62 = vpop.permute.xlu1 %893 }
 0x189   :  { %v902_v28 = vsel %vm1534_vm5, %v894_v62, 0.0  ;;  %v2720_v5 = vadd.f32 %v968_v18, %v934_v19  ;;  %v892_v4 = vpop.permute.xlu0 %891  ;;  %v2723_v59 = vpop.permute.xlu2 %983  ;;  %v2774_v19 = vld [vmem:[%s3145_s3 + $0x16] ss:$0 sm:$0xff] }
 0x18a   :  { %v912_v2 = vmul.f32 %v2615_v17, %v902_v28  ;;  %v901_v45 = vsel %vm1534_vm5, %v892_v4, 0.0  ;;  %v2788_v4 = vld [vmem:[%s3145_s3 + $0x19] ss:$0 sm:$0xff] }
 0x18b   :  { %v911_v33 = vmul.f32 %v2615_v17, %v901_v45 }
 0x18c   :  { %v920_v7 = vadd.f32 %v912_v2, %v2628_v20  ;;  %v2783_v2 = vld [vmem:[%s3145_s3 + $0x18] ss:$0 sm:$0xff] }
 0x18d   :  { %v919_v44 = vadd.f32 %v911_v33, %v853_v39 }
 0x18e   :  { %v2734_v55 = vadd.f32 %v930_v36, %v920_v7  ;;  %v1025_v36 = vmul.f32 %v2774_v19, %v2147_v21  ;;  %v2797_v21 = vld [vmem:[%s3145_s3 + $0x17] ss:$0 sm:$0xff] }
 0x18f   :  { %v937_v35 = vadd.f32 %v929_v46, %v919_v44 }
 0x190   :  { %v944_v38 = vpop.permute.xlu1 %943 }
 0x191   :  { %v957_v61 = vsel %vm1594_vm9, %v944_v38, 0.0  ;;  %v2738_v27 = vadd.f32 %v971_v12, %v937_v35  ;;  %v942_v31 = vpop.permute.xlu0 %941  ;;  %v2741_v25 = vpop.permute.xlu2 %989 }
 0x192   :  { %v967_v50 = vmul.f32 %v2681_v8, %v957_v61  ;;  %v956_v7 = vsel %vm1594_vm9, %v942_v31, 0.0  ;;  %v2808_v61 = vmul.f32 %v2788_v4, %v2555_v52  ;;  %v1151_v31 = vmul.f32 %v2788_v4, %v2528_v24  ;;  %v2835_v24 = vld [vmem:[%s3146_s1 + $0x1] ss:$0 sm:$0xff] }
 0x193   :  { %v998_v52 = vsel %vm1534_vm5, %v2723_v59, 0.0  ;;  %v966_v59 = vmul.f32 %v2681_v8, %v956_v7 }
 0x194   :  { %v2744_v53 = vadd.f32 %v967_v50, %v2658_v10  ;;  %v2812_v50 = vmul.f32 %v2788_v4, %v2564_v63  ;;  %v2830_v63 = vld [vmem:[%s3146_s1] ss:$0 sm:$0xff] }
 0x198   :  { %v950_v17 = vpop.permute.xlu1 %949 }
 0x199   :  { %v960_v20 = vsel %vm1594_vm9, %v950_v17, 0.0  ;;  %v2749_v58 = vpop.permute.xlu0 %947  ;;  %v2751_v29 = vpop.permute.xlu2 %995  ;;  %v2818_v17 = vmul.f32 %v2788_v4, %v2591_v43  ;;  %v1154_v43 = vmul.f32 %v2788_v4, %v2568_v57  ;;  %v1028_v57 = vmul.f32 %v2774_v19, %v2214_v48  ;;  %v1292_v48 = vld [vmem:[%s3144_s0 + $0x8] sm:$0xff] }
 0x19a   :  { %v970_v39 = vmul.f32 %v2681_v8, %v960_v20  ;;  %v2822_v20 = vmul.f32 %v2788_v4, %v2600_v26  ;;  %v2841_v26 = vmul.f32 %v2788_v4, %v2604_v15  ;;  %v1008_v15 = vmul.f32 %v2766_v13, %v998_v52 }
 0x19c   :  { %v2753_v16 = vadd.f32 %v970_v39, %v936_v30 }
 0x1a0   :  { %v982_v3 = vpop.permute.xlu1 %981 }
 0x1a1   :  { %v2755_v32 = vpop.permute.xlu0 %953  ;;  %v2757_v9 = vpop.permute.xlu2 %1045  ;;  %v997_v0 = vsel %vm1534_vm5, %v982_v3, 0.0  ;;  %v2846_v3 = vmul.f32 %v2774_v19, %v2167_v6 }
 0x1a2   :  { %v1007_v18 = vmul.f32 %v2766_v13, %v997_v0 }
 0x1a4   :  { %v1015_v62 = vadd.f32 %v1007_v18, %v973_v41 }
 0x1a6   :  { %v1033_v12 = vadd.f32 %v1025_v36, %v1015_v62  ;;  %v1001_v62 = vsel %vm1534_vm5, %v2741_v25, 0.0  ;;  %v1293_v25 = vld [vmem:[%s3144_s0 + $0x48] sm:$0xff] }
 0x1a8   :  { %v988_v51 = vpop.permute.xlu1 %987 }
 0x1a9   :  { %v986_v10 = vpop.permute.xlu0 %985  ;;  %v2759_v54 = vpop.permute.xlu2 %1051  ;;  %v1000_v45 = vsel %vm1534_vm5, %v988_v51, 0.0 }
 0x1aa   :  { %v1010_v44 = vmul.f32 %v2766_v13, %v1000_v45  ;;  %v999_v0 = vsel %vm1534_vm5, %v986_v10, 0.0  ;;  %v959_v10 = vsel %vm1594_vm9, %v2749_v58, 0.0  ;;  %v974_v58 = vadd.f32 %v966_v59, %v2694_v14 }
 0x1ab   :  { %v1009_v7 = vmul.f32 %v2766_v13, %v999_v0  ;;  %v1011_v14 = vmul.f32 %v2766_v13, %v1001_v62  ;;  %v1030_v59 = vmul.f32 %v2774_v19, %v2242_v11  ;;  %v1059_v11 = vsel %vm1594_vm9, %v2757_v9, 0.0 }
 0x1ac   :  { %v1018_v51 = vadd.f32 %v1010_v44, %v2720_v5 }
 0x1b0   :  { %v994_v37 = vpop.permute.xlu1 %993 }
 0x1b1   :  { %v2768_v30 = vpop.permute.xlu0 %991  ;;  %v1108_v49 = vpop.permute.xlu2 %1107  ;;  %v1003_v36 = vsel %vm1534_vm5, %v994_v37, 0.0  ;;  %v83_v37 = vmul.f32 %v1293_v25, %v2835_v24 }
 0x1b2   :  { %v1123_v41 = vsel %vm1534_vm5, %v1108_v49, 0.0  ;;  %v1002_v0 = vsel %vm1534_vm5, %v2768_v30, 0.0  ;;  %v1295_v30 = vld [vmem:[%s3144_s0 + $0x60] sm:$0xff] }
 0x1b3   :  { %v1133_v38 = vmul.f32 %v2783_v2, %v1123_v41  ;;  %v64_v41 = vmul.f32 %v1292_v48, %v2830_v63  ;;  %v1012_v25 = vmul.f32 %v2766_v13, %v1002_v0  ;;  %v1296_v0 = vld [vmem:[%s3144_s0 + $0x40] sm:$0xff] }
 0x1b8   :  { %v2776_v28 = vpop.permute.xlu1 %1043 }
 0x1b9   :  { %v1042_v23 = vpop.permute.xlu0 %1041  ;;  %v1114_v46 = vpop.permute.xlu2 %1113 }
 0x1ba   :  { %v1057_v33 = vsel %vm1594_vm9, %v1042_v23, 0.0  ;;  %v1126_v5 = vsel %vm1534_vm5, %v1114_v46, 0.0  ;;  %v2877_v23 = vld [vmem:[%s3146_s1 + $0x2] ss:$0 sm:$0xff] }
 0x1bb   :  { %v1067_v35 = vmul.f32 %v2797_v21, %v1057_v33  ;;  %v1027_v33 = vmul.f32 %v2774_v19, %v2185_v42  ;;  %v1136_v52 = vmul.f32 %v2783_v2, %v1126_v5  ;;  %v1031_v42 = vmul.f32 %v2774_v19, %v2267_v1  ;;  %v1294_v1 = vld [vmem:[%s3144_s0 + $0x20] sm:$0xff] }
 0x1bc   :  { %v67_v62 = vmul.f32 %v1294_v1, %v2830_v63  ;;  %v1016_v5 = vadd.f32 %v1008_v15, %v974_v58 }
 0x1bd   :  { %v1075_v39 = vadd.f32 %v1067_v35, %v1033_v12  ;;  %v1013_v12 = vmul.f32 %v2766_v13, %v1003_v36  ;;  %v1036_v35 = vadd.f32 %v1028_v57, %v1018_v51  ;;  %v110_v57 = vmul.f32 %v2877_v23, %v2167_v6 }
 0x1be   :  { %v962_v36 = vsel %vm1594_vm9, %v2755_v32, 0.0  ;;  %v86_v6 = vmul.f32 %v1295_v30, %v2835_v24  ;;  %v1034_v1 = vadd.f32 %v2846_v3, %v1016_v5 }
 0x1bf   :  { %v1141_v49 = vadd.f32 %v1133_v38, %v1075_v39  ;;  %v1021_v32 = vadd.f32 %v1013_v12, %v2738_v27  ;;  %v972_v15 = vmul.f32 %v2681_v8, %v962_v36 }
 0x1c0   :  { %v2851_v18 = vpop.permute.xlu1 %1049  ;;  %v94_v12 = vadd.f32 %v86_v6, %v67_v62 }
 0x1c1   :  { %v1048_v45 = vpop.permute.xlu0 %1047  ;;  %v2879_v46 = vadd.f32 %v1151_v31, %v1141_v49  ;;  %v1120_v39 = vpop.permute.xlu2 %1119  ;;  %v969_v31 = vmul.f32 %v2681_v8, %v959_v10  ;;  %v91_v49 = vadd.f32 %v83_v37, %v64_v41  ;;  %v1017_v10 = vadd.f32 %v1009_v7, %v2744_v53  ;;  %v2931_v7 = vld [vmem:[%s3147_s2] ss:$0 sm:$0xff] }
 0x1c2   :  { %v1060_v44 = vsel %vm1594_vm9, %v1048_v45, 0.0  ;;  %v1004_v41 = vsel %vm1534_vm5, %v2751_v29, 0.0  ;;  %v1129_v37 = vsel %vm1534_vm5, %v1120_v39, 0.0  ;;  %v1069_v53 = vmul.f32 %v2797_v21, %v1059_v11 }
 0x1c3   :  { %v1070_v38 = vmul.f32 %v2797_v21, %v1060_v44  ;;  %v977_v9 = vadd.f32 %v969_v31, %v2714_v47  ;;  %v118_v27 = vadd.f32 %v110_v57, %v91_v49  ;;  %v1058_v29 = vsel %vm1594_vm9, %v2776_v28, 0.0 }
 0x1c4   :  { %v113_v8 = vmul.f32 %v2877_v23, %v2219_v22  ;;  %v1139_v39 = vmul.f32 %v2783_v2, %v1129_v37  ;;  %v1062_v28 = vsel %vm1594_vm9, %v2759_v54, 0.0  ;;  %v1068_v49 = vmul.f32 %v2797_v21, %v1058_v29  ;;  %v2974_v37 = vld [vmem:[%s3145_s3 + $0x1a] ss:$0 sm:$0xff] }
 0x1c5   :  { %v1078_v51 = vadd.f32 %v1070_v38, %v1036_v35  ;;  %v1035_v35 = vadd.f32 %v1027_v33, %v1017_v10  ;;  %v1039_v38 = vadd.f32 %v1031_v42, %v1021_v32  ;;  %v1297_v33 = vld [vmem:[%s3144_s0] sm:$0xff]  ;;  %v130_v54 = vadd.f32 %v2931_v7, %v118_v27 }
 0x1c6   :  { %v63_v42 = vmul.f32 %v1297_v33, %v2830_v63  ;;  %v1019_v36 = vadd.f32 %v1011_v14, %v977_v9  ;;  %v1014_v11 = vmul.f32 %v2766_v13, %v1004_v41  ;;  %v121_v62 = vadd.f32 %v113_v8, %v94_v12  ;;  %v1298_v14 = vld [vmem:[%s3144_s0 + $0x80] sm:$0xff] }
 0x1c7   :  { %v1144_v45 = vadd.f32 %v1136_v52, %v1078_v51  ;;  %v82_v51 = vmul.f32 %v1296_v0, %v2835_v24  ;;  %v980_v30 = vadd.f32 %v972_v15, %v2734_v55  ;;  %v1077_v6 = vadd.f32 %v1069_v53, %v1035_v35 }
 0x1c8   :  { %v2917_v48 = vpop.permute.xlu1 %1055  ;;  %v1072_v10 = vmul.f32 %v2797_v21, %v1062_v28  ;;  %v109_v13 = vmul.f32 %v1298_v14, %v2877_v23  ;;  %v1076_v3 = vadd.f32 %v1068_v49, %v1034_v1  ;;  %v138_v41 = vmax.f32 %v130_v54, 0.0 }
 0x1c9   :  { %v1054_v58 = vpop.permute.xlu0 %1053  ;;  %v2933_v47 = vadd.f32 %v1154_v43, %v1144_v45  ;;  %v1170_v31 = vpop.permute.xlu2 %1169  ;;  %v1020_v43 = vadd.f32 %v1012_v25, %v2753_v16  ;;  %v1029_v16 = vmul.f32 %v2774_v19, %v2219_v22  ;;  %v90_v9 = vadd.f32 %v82_v51, %v63_v42  ;;  %v1301_v42 = vld [vmem:[%s3144_s0 + $0x18] sm:$0xff] }
 0x1ca   :  { %v1063_v44 = vsel %vm1594_vm9, %v1054_v58, 0.0  ;;  %v1061_v15 = vsel %vm1594_vm9, %v2851_v18, 0.0  ;;  %v1184_v58 = vsel %vm1594_vm9, %v1170_v31, 0.0  ;;  %v2987_v27 = vadd.f32 %v2931_v7, %v121_v62 }
 0x1cb   :  { %v1073_v52 = vmul.f32 %v2797_v21, %v1063_v44  ;;  %v1038_v25 = vadd.f32 %v1030_v59, %v1020_v43  ;;  %v89_v18 = vmul.f32 %v2469_v56, %v2835_v24  ;;  %v1022_v8 = vadd.f32 %v1014_v11, %v980_v30 }
 0x1cc   :  { %v1037_v35 = vadd.f32 %v1029_v16, %v1019_v36  ;;  %v1071_v31 = vmul.f32 %v2797_v21, %v1061_v15  ;;  %v1194_v28 = vmul.f32 %v2974_v37, %v1184_v58  ;;  %v146_v56 = vmin.f32 %v138_v41, 6.0 }
 0x1cd   :  { %v1081_v57 = vadd.f32 %v1073_v52, %v1039_v38  ;;  %v1300_v38 = vld [vmem:[%s3144_s0 + $0xb8] sm:$0xff]  ;;  %v1080_v33 = vadd.f32 %v1072_v10, %v1038_v25  ;;  %v66_v49 = vmul.f32 %v1301_v42, %v2830_v63  ;;  %v141_v36 = vmax.f32 %v2987_v27, 0.0 }
 0x1ce   :  { %v1032_v52 = vmul.f32 %v1300_v38, %v2774_v19  ;;  %v1302_v19 = vld [vmem:[%s3144_s0 + $0x58] sm:$0xff]  ;;  %v116_v1 = vmul.f32 %v1300_v38, %v2877_v23  ;;  %v1064_v25 = vsel %vm1594_vm9, %v2917_v48, 0.0 }
 0x1cf   :  { %v1147_v32 = vadd.f32 %v1139_v39, %v1081_v57  ;;  %v117_v39 = vadd.f32 %v109_v13, %v90_v9  ;;  %v85_v16 = vmul.f32 %v1302_v19, %v2835_v24  ;;  %v3016_v57 = vld [vmem:[%s3148_s4] ss:$0 sm:$0xff]  ;;  %v1074_v27 = vmul.f32 %v2797_v21, %v1064_v25  ;;  %v1307_v21 = vld [vmem:[%s3144_s0 + $0x30] sm:$0xff] }
 0x1d0   :  { %v1112_v45 = vpop.permute.xlu1 %1111 }
 0x1d1   :  { %v1125_v22 = vsel %vm1534_vm5, %v1112_v45, 0.0  ;;  %v1110_v55 = vpop.permute.xlu0 %1109  ;;  %v2977_v59 = vadd.f32 %v2841_v26, %v1147_v32  ;;  %v1299_v26 = vld [vmem:[%s3144_s0 + $0x38] sm:$0xff]  ;;  %v1176_v0 = vpop.permute.xlu2 %1175  ;;  %v129_v30 = vadd.f32 %v2931_v7, %v117_v39  ;;  %v1079_v45 = vadd.f32 %v1071_v31, %v1037_v35 }
 0x1d2   :  { %v1135_v5 = vmul.f32 %v2783_v2, %v1125_v22  ;;  %v1124_v53 = vsel %vm1534_vm5, %v1110_v55, 0.0  ;;  %v70_v12 = vmul.f32 %v1299_v26, %v2830_v63  ;;  %v1305_v55 = vld [vmem:[%s3144_s0 + $0x98] sm:$0xff]  ;;  %v1306_v26 = vld [vmem:[%s3144_s0 + $0x90] sm:$0xff]  ;;  %v1158_v31 = vmul.f32 %v2788_v4, %v2642_v34 }
 0x1d3   :  { %v1134_v44 = vmul.f32 %v2783_v2, %v1124_v53  ;;  %v112_v41 = vmul.f32 %v1305_v55, %v2877_v23 }
 0x1d4   :  { %v1143_v29 = vadd.f32 %v1135_v5, %v1077_v6  ;;  %v97_v11 = vadd.f32 %v89_v18, %v70_v12  ;;  %v1303_v6 = vld [vmem:[%s3144_s0 + $0x10] sm:$0xff]  ;;  %v93_v5 = vadd.f32 %v85_v16, %v66_v49  ;;  %v111_v12 = vmul.f32 %v1306_v26, %v2877_v23 }
 0x1d5   :  { %v1142_v43 = vadd.f32 %v1134_v44, %v1076_v3  ;;  %v65_v10 = vmul.f32 %v1303_v6, %v2830_v63  ;;  %v1187_v3 = vsel %vm1594_vm9, %v1176_v0, 0.0  ;;  %v1308_v0 = vld [vmem:[%s3144_s0 + $0x70] sm:$0xff] }
 0x1d6   :  { %v3003_v51 = vadd.f32 %v2808_v61, %v1143_v29  ;;  %v124_v58 = vadd.f32 %v116_v1, %v97_v11  ;;  %v137_v29 = vmax.f32 %v129_v30, 0.0  ;;  %v1197_v38 = vmul.f32 %v2974_v37, %v1187_v3 }
 0x1d7   :  { %v1160_v61 = vadd.f32 %v2812_v50, %v1142_v43  ;;  %v1304_v50 = vld [vmem:[%s3144_s0 + $0x50] sm:$0xff]  ;;  %v120_v43 = vadd.f32 %v112_v41, %v93_v5 }
 0x1d8   :  { %v1118_v54 = vpop.permute.xlu1 %1117  ;;  %v84_v32 = vmul.f32 %v1304_v50, %v2835_v24  ;;  %v136_v42 = vadd.f32 %v2931_v7, %v124_v58  ;;  %v145_v11 = vmin.f32 %v137_v29, 6.0 }
 0x1d9   :  { %v1128_v62 = vsel %vm1534_vm5, %v1118_v54, 0.0  ;;  %v1202_v22 = vadd.f32 %v1194_v28, %v1160_v61  ;;  %v1116_v13 = vpop.permute.xlu0 %1115  ;;  %v69_v28 = vmul.f32 %v1307_v21, %v2830_v63  ;;  %v1182_v49 = vpop.permute.xlu2 %1181  ;;  %v1309_v61 = vld [vmem:[%s3144_s0 + $0x28] sm:$0xff] }
 0x1da   :  { %v1138_v14 = vmul.f32 %v2783_v2, %v1128_v62  ;;  %v1127_v9 = vsel %vm1534_vm5, %v1116_v13, 0.0  ;;  %v92_v44 = vadd.f32 %v84_v32, %v65_v10  ;;  %v1190_v6 = vsel %vm1594_vm9, %v1182_v49, 0.0  ;;  %v1312_v13 = vld [vmem:[%s3144_s0 + $0xa8] sm:$0xff] }
 0x1db   :  { %v1214_v15 = vadd.f32 %v3016_v57, %v1202_v22  ;;  %v1137_v53 = vmul.f32 %v2783_v2, %v1127_v9  ;;  %v144_v40 = vmax.f32 %v136_v42, 0.0  ;;  %v114_v9 = vmul.f32 %v1312_v13, %v2877_v23 }
 0x1dc   :  { %v1146_v48 = vadd.f32 %v1138_v14, %v1080_v33  ;;  %v88_v33 = vmul.f32 %v1308_v0, %v2835_v24  ;;  %v119_v16 = vadd.f32 %v111_v12, %v92_v44  ;;  %v1200_v5 = vmul.f32 %v2974_v37, %v1190_v6 }
 0x1dd   :  { %v1222_v18 = vmul.f32 %v1214_v15, %v146_v56  ;;  %v1145_v35 = vadd.f32 %v1137_v53, %v1079_v45  ;;  %v1040_v56 = vadd.f32 %v1032_v52, %v1022_v8  ;;  %v68_v8 = vmul.f32 %v1309_v61, %v2830_v63  ;;  %v1310_v52 = vld [vmem:[%s3144_s0 + $0x68] sm:$0xff]  ;;  %v1311_v45 = vld [vmem:[%s3144_s0 + $0xb0] sm:$0xff] }
 0x1de   :  { %v3053_v39 = vadd.f32 %v2818_v17, %v1146_v48  ;;  %v149_v17 = vmin.f32 %v141_v36, 6.0  ;;  %v132_v63 = vadd.f32 %v2931_v7, %v120_v43  ;;  %v96_v10 = vadd.f32 %v88_v33, %v69_v28 }
 0x1df   :  { %1230 = vst [vmem:[%s3149_s5 + $0x8] sm:$0xff] %v1222_v18  ;;  %v1163_v34 = vadd.f32 %v2822_v20, %v1145_v35  ;;  %v87_v20 = vmul.f32 %v1310_v52, %v2835_v24  ;;  %v1082_v54 = vadd.f32 %v1074_v27, %v1040_v56  ;;  %v115_v25 = vmul.f32 %v1311_v45, %v2877_v23 }
 0x1e0   :  { %v1168_v4 = vpop.permute.xlu1 %1167  ;;  %v131_v22 = vadd.f32 %v2931_v7, %v119_v16  ;;  %v140_v55 = vmax.f32 %v132_v63, 0.0  ;;  %v152_v23 = vmin.f32 %v144_v40, 6.0 }
 0x1e1   :  { %v1183_v19 = vsel %vm1594_vm9, %v1168_v4, 0.0  ;;  %v1205_v36 = vadd.f32 %v1197_v38, %v1163_v34  ;;  %v1122_v62 = vpop.permute.xlu0 %1121  ;;  %v95_v14 = vadd.f32 %v87_v20, %v68_v8  ;;  %v123_v53 = vadd.f32 %v115_v25, %v96_v10 }
 0x1e2   :  { %v1193_v1 = vmul.f32 %v2974_v37, %v1183_v19  ;;  %v1130_v30 = vsel %vm1534_vm5, %v1122_v62, 0.0  ;;  %v139_v27 = vmax.f32 %v131_v22, 0.0  ;;  %v148_v18 = vmin.f32 %v140_v55, 6.0 }
 0x1e3   :  { %v1217_v50 = vadd.f32 %v3016_v57, %v1205_v36  ;;  %v1140_v24 = vmul.f32 %v2783_v2, %v1130_v30  ;;  %v122_v12 = vadd.f32 %v114_v9, %v95_v14  ;;  %v135_v21 = vadd.f32 %v2931_v7, %v123_v53 }
 0x1e4   :  { %v1201_v32 = vadd.f32 %v1193_v1, %v2879_v46  ;;  %v147_v28 = vmin.f32 %v139_v27, 6.0 }
 0x1e5   :  { %v1225_v3 = vmul.f32 %v1217_v50, %v149_v17  ;;  %v1148_v2 = vadd.f32 %v1140_v24, %v1082_v54  ;;  %v134_v17 = vadd.f32 %v2931_v7, %v122_v12 }
 0x1e6   :  { %v1213_v46 = vadd.f32 %v3016_v57, %v1201_v32 }
 0x1e7   :  { %1233 = vst [vmem:[%s3149_s5 + $0x20] sm:$0xff] %v1225_v3  ;;  %v1166_v15 = vadd.f32 %v1158_v31, %v1148_v2  ;;  %v142_v7 = vmax.f32 %v134_v17, 0.0 }
 0x1e8   :  { %v1221_v41 = vmul.f32 %v1213_v46, %v145_v11  ;;  %v1174_v48 = vpop.permute.xlu1 %1173 }
 0x1e9   :  { %v1186_v58 = vsel %vm1594_vm9, %v1174_v48, 0.0  ;;  %v1208_v29 = vadd.f32 %v1200_v5, %v1166_v15  ;;  %v1172_v26 = vpop.permute.xlu0 %1171  ;;  %v150_v36 = vmin.f32 %v142_v7, 6.0 }
 0x1ea   :  { %1229 = vst [vmem:[%s3149_s5] sm:$0xff] %v1221_v41  ;;  %v1196_v44 = vmul.f32 %v2974_v37, %v1186_v58  ;;  %v1185_v35 = vsel %vm1594_vm9, %v1172_v26, 0.0 }
 0x1eb   :  { %v1220_v38 = vadd.f32 %v3016_v57, %v1208_v29  ;;  %v1195_v43 = vmul.f32 %v2974_v37, %v1185_v35 }
 0x1ec   :  { %v1204_v31 = vadd.f32 %v1196_v44, %v2933_v47  ;;  %v143_v47 = vmax.f32 %v135_v21, 0.0 }
 0x1ed   :  { %v1228_v0 = vmul.f32 %v1220_v38, %v152_v23  ;;  %v1203_v56 = vadd.f32 %v1195_v43, %v3003_v51 }
 0x1ee   :  { %v1216_v33 = vadd.f32 %v3016_v57, %v1204_v31  ;;  %v151_v8 = vmin.f32 %v143_v47, 6.0 }
 0x1ef   :  { %1236 = vst [vmem:[%s3149_s5 + $0x38] sm:$0xff] %v1228_v0  ;;  %v1215_v4 = vadd.f32 %v3016_v57, %v1203_v56 }
 0x1f0   :  { %v1224_v34 = vmul.f32 %v1216_v33, %v148_v18  ;;  %v1180_v42 = vpop.permute.xlu1 %1179 }
 0x1f1   :  { %v1189_v49 = vsel %vm1594_vm9, %v1180_v42, 0.0  ;;  %v1223_v19 = vmul.f32 %v1215_v4, %v147_v28  ;;  %v1178_v16 = vpop.permute.xlu0 %1177 }
 0x1f2   :  { %1232 = vst [vmem:[%s3149_s5 + $0x18] sm:$0xff] %v1224_v34  ;;  %v1199_v51 = vmul.f32 %v2974_v37, %v1189_v49  ;;  %v1188_v61 = vsel %vm1594_vm9, %v1178_v16, 0.0 }
 0x1f3   :  { %1231 = vst [vmem:[%s3149_s5 + $0x10] sm:$0xff] %v1223_v19  ;;  %v1198_v20 = vmul.f32 %v2974_v37, %v1188_v61 }
 0x1f4   :  { %v1207_v52 = vadd.f32 %v1199_v51, %v2977_v59 }
 0x1f5   :  { %v1206_v11 = vadd.f32 %v1198_v20, %v3053_v39 }
 0x1f6   :  { %v1219_v54 = vadd.f32 %v3016_v57, %v1207_v52 }
 0x1f7   :  { %v1218_v62 = vadd.f32 %v3016_v57, %v1206_v11 }
 0x1f8   :  { %v1227_v1 = vmul.f32 %v1219_v54, %v151_v8 }
 0x1f9   :  { %v1226_v60 = vmul.f32 %v1218_v62, %v150_v36 }
 0x1fa   :  { %1235 = vst [vmem:[%s3149_s5 + $0x30] sm:$0xff] %v1227_v1 }
 0x1fb   :  { %1234 = vst [vmem:[%s3149_s5 + $0x28] sm:$0xff] %v1226_v60 }

</bundles_post_ra>
